<compile_context>
chip_gen: v6e
topology: v6e:2x2x1
jax: 0.10.0
libtpu: 0.0.40
codegen_flags: <defaults>
</compile_context>

<pallas_src>
import jax
import jax.numpy as jnp
from jax import lax
from jax.experimental import pallas as pl
from jax.experimental.pallas import tpu as pltpu

# Small deterministic hyper-parameters (module defaults scaled down).
VOCAB = 50
INPUT_SIZE = 16     # embedding dim == LSTM input_size
HIDDEN = 32
NUM_CLASSES = 7
B = 4
T = 8
H = HIDDEN
G = 4 * H           # gate width per direction, PyTorch order (i, f, g, o)


def bilstm_kernel(x_ref, len_ref,
                  wih0_ref, whh0_ref, b0_ref,
                  wih1_ref, whh1_ref, b1_ref,
                  wfc_ref, bfc_ref,
                  out_ref):
    lens = len_ref[...]                                       # (B, 1) int32

    # Per-direction time-index table: rows 0:B -> fwd time = i,
    # rows B:2B -> bwd time = T-1-i; column i = loop step.
    step = lax.broadcasted_iota(jnp.int32, (B, T), 1)
    tgrid = jnp.concatenate([step, T - 1 - step], axis=0)     # (2B, T)
    lens2 = jnp.concatenate([lens, lens], axis=0)             # (2B, 1)

    def run_layer(xg, whh_cat):
        # xg: (T*B, 2G) hoisted input projection with bias folded in.
        # whh_cat: (H, 2G) = [W_hh_fwd | W_hh_bwd].
        h = jnp.zeros((2 * B, H), jnp.float32)     # rows 0:B fwd, B:2B bwd
        c = jnp.zeros((2 * B, H), jnp.float32)
        acc = jnp.zeros((2 * B, H), jnp.float32)   # time-sum of masked outputs
        out_f = [None] * T
        out_b = [None] * T
        for i in range(T):                         # static unroll (T fixed)
            tf, tb = i, T - 1 - i
            # One fused recurrent matmul for both directions per step; the
            # cross-direction quadrants of gr are discarded.
            gr = jnp.dot(h, whh_cat,
                         preferred_element_type=jnp.float32)  # (2B, 2G)
            gates = jnp.concatenate(
                [xg[tf * B:(tf + 1) * B, 0:G] + gr[0:B, 0:G],
                 xg[tb * B:(tb + 1) * B, G:2 * G] + gr[B:2 * B, G:2 * G]],
                axis=0)                                       # (2B, G)
            i_g = jax.nn.sigmoid(gates[:, 0 * H:1 * H])
            f_g = jax.nn.sigmoid(gates[:, 1 * H:2 * H])
            g_g = jnp.tanh(gates[:, 2 * H:3 * H])
            o_g = jax.nn.sigmoid(gates[:, 3 * H:4 * H])
            c_new = f_g * c + i_g * g_g
            h_new = o_g * jnp.tanh(c_new)
            valid = tgrid[:, i:i + 1] < lens2                 # (2B, 1) bool
            h = jnp.where(valid, h_new, h)         # freeze state past length
            c = jnp.where(valid, c_new, c)
            out_t = jnp.where(valid, h_new, 0.0)   # zero padded outputs
            out_f[tf] = out_t[0:B]
            out_b[tb] = out_t[B:2 * B]
            acc = acc + out_t
        return out_f, out_b, acc

    # ---- layer 0: hoisted input projection (one matmul, bias folded) ----
    xg0 = jnp.dot(x_ref[...], wih0_ref[...],
                  preferred_element_type=jnp.float32) + b0_ref[...]   # (T*B, 2G)
    y0f, y0b, _ = run_layer(xg0, whh0_ref[...])

    # ---- layer 1: input = concat(fwd, bwd) of layer 0, projected once ----
    y0 = jnp.concatenate(
        [jnp.concatenate([y0f[t], y0b[t]], axis=1) for t in range(T)],
        axis=0)                                               # (T*B, 2H)
    xg1 = jnp.dot(y0, wih1_ref[...],
                  preferred_element_type=jnp.float32) + b1_ref[...]   # (T*B, 2G)
    _, _, acc = run_layer(xg1, whh1_ref[...])

    # ---- fc on the time-summed bidirectional features ----
    pooled = jnp.concatenate([acc[0:B], acc[B:2 * B]], axis=1)        # (B, 2H)
    out_ref[...] = (jnp.dot(pooled, wfc_ref[...],
                            preferred_element_type=jnp.float32) + bfc_ref[...])


def init_params(key):
    ks = jax.random.split(key, 16)

    def n(k, shape, scale=0.1):
        return (scale * jax.random.normal(k, shape)).astype(jnp.float32)

    # Deterministic synthetic weights (the .pkl embedding load is replaced).
    p = {"embedding": n(ks[0], (VOCAB, INPUT_SIZE), 1.0)}
    idx = 1
    for layer, d_in in ((0, INPUT_SIZE), (1, 2 * HIDDEN)):
        for dname in ("f", "b"):
            p[f"wih{layer}{dname}"] = n(ks[idx], (d_in, 4 * HIDDEN)); idx += 1
            p[f"whh{layer}{dname}"] = n(ks[idx], (HIDDEN, 4 * HIDDEN)); idx += 1
            p[f"b{layer}{dname}"] = n(ks[idx], (1, 4 * HIDDEN)); idx += 1
    p["wfc"] = n(ks[idx], (2 * HIDDEN, NUM_CLASSES)); idx += 1
    p["bfc"] = n(ks[idx], (1, NUM_CLASSES))
    return p


def bilstm_forward(token_ids, lengths, params):
    # Embedding lookup (frozen table) + weight/layout plumbing done in JAX.
    x = jnp.take(params["embedding"], token_ids, axis=0)      # (B, T, D)
    x_tm = jnp.transpose(x, (1, 0, 2)).astype(jnp.float32)    # (T, B, D)
    x_flat = x_tm.reshape(T * B, INPUT_SIZE)                  # row = t*B + b
    lens = lengths.astype(jnp.int32).reshape(B, 1)

    # Concatenate per-direction weights along lanes: [fwd | bwd].
    wih0 = jnp.concatenate([params["wih0f"], params["wih0b"]], axis=1)  # (D, 2G)
    whh0 = jnp.concatenate([params["whh0f"], params["whh0b"]], axis=1)  # (H, 2G)
    b0 = jnp.concatenate([params["b0f"], params["b0b"]], axis=1)        # (1, 2G)
    wih1 = jnp.concatenate([params["wih1f"], params["wih1b"]], axis=1)  # (2H, 2G)
    whh1 = jnp.concatenate([params["whh1f"], params["whh1b"]], axis=1)  # (H, 2G)
    b1 = jnp.concatenate([params["b1f"], params["b1b"]], axis=1)        # (1, 2G)

    inputs = [x_flat, lens, wih0, whh0, b0, wih1, whh1, b1,
              params["wfc"], params["bfc"]]

    return pl.pallas_call(
        bilstm_kernel,
        out_shape=jax.ShapeDtypeStruct((B, NUM_CLASSES), jnp.float32),
        in_specs=[pl.BlockSpec(memory_space=pltpu.MemorySpace.VMEM)] * len(inputs),
        out_specs=pl.BlockSpec(memory_space=pltpu.MemorySpace.VMEM),
    )(*inputs)


def reference_forward(token_ids, lengths, params):
    """Pure-JAX reference mirroring the packed BiLSTM semantics."""
    x = jnp.take(params["embedding"], token_ids, axis=0)      # (B, T, D)
    lens = lengths.astype(jnp.int32).reshape(B, 1)
    hp = jax.lax.Precision.HIGHEST

    def run_dir(xin, wih, whh, b, reverse):
        h = jnp.zeros((B, HIDDEN), jnp.float32)
        c = jnp.zeros((B, HIDDEN), jnp.float32)
        outs = [None] * T
        ts = range(T - 1, -1, -1) if reverse else range(T)
        for t in ts:
            gates = (jnp.dot(xin[:, t, :], wih, precision=hp) +
                     jnp.dot(h, whh, precision=hp) + b)
            i_g = jax.nn.sigmoid(gates[:, :HIDDEN])
            f_g = jax.nn.sigmoid(gates[:, HIDDEN:2 * HIDDEN])
            g_g = jnp.tanh(gates[:, 2 * HIDDEN:3 * HIDDEN])
            o_g = jax.nn.sigmoid(gates[:, 3 * HIDDEN:])
            c_new = f_g * c + i_g * g_g
            h_new = o_g * jnp.tanh(c_new)
            valid = t < lens
            h = jnp.where(valid, h_new, h)
            c = jnp.where(valid, c_new, c)
            outs[t] = jnp.where(valid, h_new, 0.0)
        return jnp.stack(outs, axis=1)                        # (B, T, H)

    y0 = jnp.concatenate(
        [run_dir(x, params["wih0f"], params["whh0f"], params["b0f"], False),
         run_dir(x, params["wih0b"], params["whh0b"], params["b0b"], True)], axis=-1)
    y1 = jnp.concatenate(
        [run_dir(y0, params["wih1f"], params["whh1f"], params["b1f"], False),
         run_dir(y0, params["wih1b"], params["whh1b"], params["b1b"], True)], axis=-1)
    pooled = jnp.sum(y1, axis=1)                              # (B, 2H)
    return jnp.dot(pooled, params["wfc"], precision=hp) + params["bfc"]


if __name__ == "__main__":
    key = jax.random.PRNGKey(0)
    pkey, dkey = jax.random.split(key)
    params = init_params(pkey)

    token_ids = jax.random.randint(dkey, (B, T), 0, VOCAB, dtype=jnp.int32)
    lengths = jnp.array([T, 5, 3, 6], dtype=jnp.int32)        # valid lengths per batch

    out = bilstm_forward(token_ids, lengths, params)
    out = jax.block_until_ready(out)

    ref = reference_forward(token_ids, lengths, params)
    assert out.shape == (B, NUM_CLASSES)
    assert bool(jnp.allclose(out, ref, rtol=1e-2, atol=1e-2)), (out, ref)
    print("KERNEL_OK")
</pallas_src>

<mosaic_0001>
module attributes {stable_mosaic.version = 11 : i64} {
  func.func @bilstm_kernel(%arg0: memref<32x16xf32, #tpu.memory_space<vmem>>, %arg1: memref<4x1xi32, #tpu.memory_space<vmem>>, %arg2: memref<16x256xf32, #tpu.memory_space<vmem>>, %arg3: memref<32x256xf32, #tpu.memory_space<vmem>>, %arg4: memref<1x256xf32, #tpu.memory_space<vmem>>, %arg5: memref<64x256xf32, #tpu.memory_space<vmem>>, %arg6: memref<32x256xf32, #tpu.memory_space<vmem>>, %arg7: memref<1x256xf32, #tpu.memory_space<vmem>>, %arg8: memref<64x7xf32, #tpu.memory_space<vmem>>, %arg9: memref<1x7xf32, #tpu.memory_space<vmem>>, %arg10: memref<4x7xf32, #tpu.memory_space<vmem>>) attributes {dimension_semantics = [], scalar_prefetch = 0 : i64, scratch_operands = 0 : i64, tpu.core_type = #tpu.core_type<tc>} {
    %c0 = arith.constant 0 : index
    %c0_0 = arith.constant 0 : index
    %0 = vector.load %arg1[%c0, %c0_0] : memref<4x1xi32, #tpu.memory_space<vmem>>, vector<4x1xi32>
    %1 = tpu.iota {dimensions = array<i32: 1>} : vector<4x8xi32>
    %c7_i32 = arith.constant 7 : i32
    %2 = vector.broadcast %c7_i32 : i32 to vector<4x8xi32>
    %3 = arith.subi %2, %1 : vector<4x8xi32>
    %4 = tpu.concatenate %1, %3 in 0 : vector<4x8xi32>, vector<4x8xi32> -> vector<8x8xi32>
    %5 = tpu.concatenate %0, %0 in 0 : vector<4x1xi32>, vector<4x1xi32> -> vector<8x1xi32>
    %c0_1 = arith.constant 0 : index
    %c0_2 = arith.constant 0 : index
    %6 = vector.load %arg0[%c0_1, %c0_2] : memref<32x16xf32, #tpu.memory_space<vmem>>, vector<32x16xf32>
    %c0_3 = arith.constant 0 : index
    %c0_4 = arith.constant 0 : index
    %7 = vector.load %arg2[%c0_3, %c0_4] : memref<16x256xf32, #tpu.memory_space<vmem>>, vector<16x256xf32>
    %cst = arith.constant dense<0.000000e+00> : vector<32x256xf32>
    %8 = tpu.matmul %6, %7, %cst {dimension_numbers = #tpu.dot_dimension_numbers<[1], [0], [0], [1], [0, 0, 1, 1], [], []>} : vector<32x16xf32>, vector<16x256xf32>, vector<32x256xf32> -> vector<32x256xf32>
    %c0_5 = arith.constant 0 : index
    %c0_6 = arith.constant 0 : index
    %9 = vector.load %arg4[%c0_5, %c0_6] : memref<1x256xf32, #tpu.memory_space<vmem>>, vector<1x256xf32>
    %10 = vector.broadcast %9 : vector<1x256xf32> to vector<32x256xf32>
    %11 = arith.addf %8, %10 : vector<32x256xf32>
    %c0_7 = arith.constant 0 : index
    %c0_8 = arith.constant 0 : index
    %12 = vector.load %arg3[%c0_7, %c0_8] : memref<32x256xf32, #tpu.memory_space<vmem>>, vector<32x256xf32>
    %cst_9 = arith.constant 0.000000e+00 : f32
    %13 = vector.broadcast %cst_9 : f32 to vector<8x32xf32>
    %cst_10 = arith.constant 0.000000e+00 : f32
    %14 = vector.broadcast %cst_10 : f32 to vector<8x32xf32>
    %cst_11 = arith.constant dense<0.000000e+00> : vector<8x256xf32>
    %15 = tpu.matmul %13, %12, %cst_11 {dimension_numbers = #tpu.dot_dimension_numbers<[1], [0], [0], [1], [0, 0, 1, 1], [], []>} : vector<8x32xf32>, vector<32x256xf32>, vector<8x256xf32> -> vector<8x256xf32>
    %16 = vector.extract_strided_slice %11 {offsets = [0, 0], sizes = [4, 128], strides = [1, 1]} : vector<32x256xf32> to vector<4x128xf32>
    %17 = vector.extract_strided_slice %15 {offsets = [0, 0], sizes = [4, 128], strides = [1, 1]} : vector<8x256xf32> to vector<4x128xf32>
    %18 = arith.addf %16, %17 : vector<4x128xf32>
    %19 = vector.extract_strided_slice %11 {offsets = [28, 128], sizes = [4, 128], strides = [1, 1]} : vector<32x256xf32> to vector<4x128xf32>
    %20 = vector.extract_strided_slice %15 {offsets = [4, 128], sizes = [4, 128], strides = [1, 1]} : vector<8x256xf32> to vector<4x128xf32>
    %21 = arith.addf %19, %20 : vector<4x128xf32>
    %22 = tpu.concatenate %18, %21 in 0 : vector<4x128xf32>, vector<4x128xf32> -> vector<8x128xf32>
    %23 = vector.extract_strided_slice %22 {offsets = [0, 0], sizes = [8, 32], strides = [1, 1]} : vector<8x128xf32> to vector<8x32xf32>
    %24 = arith.negf %23 : vector<8x32xf32>
    %25 = math.exp %24 : vector<8x32xf32>
    %cst_12 = arith.constant 1.000000e+00 : f32
    %26 = vector.broadcast %cst_12 : f32 to vector<8x32xf32>
    %27 = arith.addf %26, %25 : vector<8x32xf32>
    %28 = arith.divf %26, %27 : vector<8x32xf32>
    %29 = vector.extract_strided_slice %22 {offsets = [0, 32], sizes = [8, 32], strides = [1, 1]} : vector<8x128xf32> to vector<8x32xf32>
    %30 = arith.negf %29 : vector<8x32xf32>
    %31 = math.exp %30 : vector<8x32xf32>
    %cst_13 = arith.constant 1.000000e+00 : f32
    %32 = vector.broadcast %cst_13 : f32 to vector<8x32xf32>
    %33 = arith.addf %32, %31 : vector<8x32xf32>
    %34 = arith.divf %32, %33 : vector<8x32xf32>
    %35 = vector.extract_strided_slice %22 {offsets = [0, 64], sizes = [8, 32], strides = [1, 1]} : vector<8x128xf32> to vector<8x32xf32>
    %36 = math.tanh %35 : vector<8x32xf32>
    %37 = vector.extract_strided_slice %22 {offsets = [0, 96], sizes = [8, 32], strides = [1, 1]} : vector<8x128xf32> to vector<8x32xf32>
    %38 = arith.negf %37 : vector<8x32xf32>
    %39 = math.exp %38 : vector<8x32xf32>
    %cst_14 = arith.constant 1.000000e+00 : f32
    %40 = vector.broadcast %cst_14 : f32 to vector<8x32xf32>
    %41 = arith.addf %40, %39 : vector<8x32xf32>
    %42 = arith.divf %40, %41 : vector<8x32xf32>
    %43 = arith.mulf %34, %14 : vector<8x32xf32>
    %44 = arith.mulf %28, %36 : vector<8x32xf32>
    %45 = arith.addf %43, %44 : vector<8x32xf32>
    %46 = math.tanh %45 : vector<8x32xf32>
    %47 = arith.mulf %42, %46 : vector<8x32xf32>
    %48 = vector.extract_strided_slice %4 {offsets = [0, 0], sizes = [8, 1], strides = [1, 1]} : vector<8x8xi32> to vector<8x1xi32>
    %49 = arith.cmpi slt, %48, %5 : vector<8x1xi32>
    %50 = vector.shape_cast %49 : vector<8x1xi1> to vector<8x1xi1>
    %51 = vector.broadcast %50 : vector<8x1xi1> to vector<8x32xi1>
    %52 = arith.select %51, %47, %13 : vector<8x32xi1>, vector<8x32xf32>
    %53 = vector.shape_cast %49 : vector<8x1xi1> to vector<8x1xi1>
    %54 = vector.broadcast %53 : vector<8x1xi1> to vector<8x32xi1>
    %55 = arith.select %54, %45, %14 : vector<8x32xi1>, vector<8x32xf32>
    %cst_15 = arith.constant 0.000000e+00 : f32
    %56 = vector.shape_cast %49 : vector<8x1xi1> to vector<8x1xi1>
    %57 = vector.broadcast %56 : vector<8x1xi1> to vector<8x32xi1>
    %58 = vector.broadcast %cst_15 : f32 to vector<8x32xf32>
    %59 = arith.select %57, %47, %58 : vector<8x32xi1>, vector<8x32xf32>
    %60 = vector.extract_strided_slice %59 {offsets = [0, 0], sizes = [4, 32], strides = [1, 1]} : vector<8x32xf32> to vector<4x32xf32>
    %61 = vector.extract_strided_slice %59 {offsets = [4, 0], sizes = [4, 32], strides = [1, 1]} : vector<8x32xf32> to vector<4x32xf32>
    %cst_16 = arith.constant dense<0.000000e+00> : vector<8x256xf32>
    %62 = tpu.matmul %52, %12, %cst_16 {dimension_numbers = #tpu.dot_dimension_numbers<[1], [0], [0], [1], [0, 0, 1, 1], [], []>} : vector<8x32xf32>, vector<32x256xf32>, vector<8x256xf32> -> vector<8x256xf32>
    %63 = vector.extract_strided_slice %11 {offsets = [4, 0], sizes = [4, 128], strides = [1, 1]} : vector<32x256xf32> to vector<4x128xf32>
    %64 = vector.extract_strided_slice %62 {offsets = [0, 0], sizes = [4, 128], strides = [1, 1]} : vector<8x256xf32> to vector<4x128xf32>
    %65 = arith.addf %63, %64 : vector<4x128xf32>
    %66 = vector.extract_strided_slice %11 {offsets = [24, 128], sizes = [4, 128], strides = [1, 1]} : vector<32x256xf32> to vector<4x128xf32>
    %67 = vector.extract_strided_slice %62 {offsets = [4, 128], sizes = [4, 128], strides = [1, 1]} : vector<8x256xf32> to vector<4x128xf32>
    %68 = arith.addf %66, %67 : vector<4x128xf32>
    %69 = tpu.concatenate %65, %68 in 0 : vector<4x128xf32>, vector<4x128xf32> -> vector<8x128xf32>
    %70 = vector.extract_strided_slice %69 {offsets = [0, 0], sizes = [8, 32], strides = [1, 1]} : vector<8x128xf32> to vector<8x32xf32>
    %71 = arith.negf %70 : vector<8x32xf32>
    %72 = math.exp %71 : vector<8x32xf32>
    %cst_17 = arith.constant 1.000000e+00 : f32
    %73 = vector.broadcast %cst_17 : f32 to vector<8x32xf32>
    %74 = arith.addf %73, %72 : vector<8x32xf32>
    %75 = arith.divf %73, %74 : vector<8x32xf32>
    %76 = vector.extract_strided_slice %69 {offsets = [0, 32], sizes = [8, 32], strides = [1, 1]} : vector<8x128xf32> to vector<8x32xf32>
    %77 = arith.negf %76 : vector<8x32xf32>
    %78 = math.exp %77 : vector<8x32xf32>
    %cst_18 = arith.constant 1.000000e+00 : f32
    %79 = vector.broadcast %cst_18 : f32 to vector<8x32xf32>
    %80 = arith.addf %79, %78 : vector<8x32xf32>
    %81 = arith.divf %79, %80 : vector<8x32xf32>
    %82 = vector.extract_strided_slice %69 {offsets = [0, 64], sizes = [8, 32], strides = [1, 1]} : vector<8x128xf32> to vector<8x32xf32>
    %83 = math.tanh %82 : vector<8x32xf32>
    %84 = vector.extract_strided_slice %69 {offsets = [0, 96], sizes = [8, 32], strides = [1, 1]} : vector<8x128xf32> to vector<8x32xf32>
    %85 = arith.negf %84 : vector<8x32xf32>
    %86 = math.exp %85 : vector<8x32xf32>
    %cst_19 = arith.constant 1.000000e+00 : f32
    %87 = vector.broadcast %cst_19 : f32 to vector<8x32xf32>
    %88 = arith.addf %87, %86 : vector<8x32xf32>
    %89 = arith.divf %87, %88 : vector<8x32xf32>
    %90 = arith.mulf %81, %55 : vector<8x32xf32>
    %91 = arith.mulf %75, %83 : vector<8x32xf32>
    %92 = arith.addf %90, %91 : vector<8x32xf32>
    %93 = math.tanh %92 : vector<8x32xf32>
    %94 = arith.mulf %89, %93 : vector<8x32xf32>
    %95 = vector.extract_strided_slice %4 {offsets = [0, 1], sizes = [8, 1], strides = [1, 1]} : vector<8x8xi32> to vector<8x1xi32>
    %96 = arith.cmpi slt, %95, %5 : vector<8x1xi32>
    %97 = vector.shape_cast %96 : vector<8x1xi1> to vector<8x1xi1>
    %98 = vector.broadcast %97 : vector<8x1xi1> to vector<8x32xi1>
    %99 = arith.select %98, %94, %52 : vector<8x32xi1>, vector<8x32xf32>
    %100 = vector.shape_cast %96 : vector<8x1xi1> to vector<8x1xi1>
    %101 = vector.broadcast %100 : vector<8x1xi1> to vector<8x32xi1>
    %102 = arith.select %101, %92, %55 : vector<8x32xi1>, vector<8x32xf32>
    %cst_20 = arith.constant 0.000000e+00 : f32
    %103 = vector.shape_cast %96 : vector<8x1xi1> to vector<8x1xi1>
    %104 = vector.broadcast %103 : vector<8x1xi1> to vector<8x32xi1>
    %105 = vector.broadcast %cst_20 : f32 to vector<8x32xf32>
    %106 = arith.select %104, %94, %105 : vector<8x32xi1>, vector<8x32xf32>
    %107 = vector.extract_strided_slice %106 {offsets = [0, 0], sizes = [4, 32], strides = [1, 1]} : vector<8x32xf32> to vector<4x32xf32>
    %108 = vector.extract_strided_slice %106 {offsets = [4, 0], sizes = [4, 32], strides = [1, 1]} : vector<8x32xf32> to vector<4x32xf32>
    %cst_21 = arith.constant dense<0.000000e+00> : vector<8x256xf32>
    %109 = tpu.matmul %99, %12, %cst_21 {dimension_numbers = #tpu.dot_dimension_numbers<[1], [0], [0], [1], [0, 0, 1, 1], [], []>} : vector<8x32xf32>, vector<32x256xf32>, vector<8x256xf32> -> vector<8x256xf32>
    %110 = vector.extract_strided_slice %11 {offsets = [8, 0], sizes = [4, 128], strides = [1, 1]} : vector<32x256xf32> to vector<4x128xf32>
    %111 = vector.extract_strided_slice %109 {offsets = [0, 0], sizes = [4, 128], strides = [1, 1]} : vector<8x256xf32> to vector<4x128xf32>
    %112 = arith.addf %110, %111 : vector<4x128xf32>
    %113 = vector.extract_strided_slice %11 {offsets = [20, 128], sizes = [4, 128], strides = [1, 1]} : vector<32x256xf32> to vector<4x128xf32>
    %114 = vector.extract_strided_slice %109 {offsets = [4, 128], sizes = [4, 128], strides = [1, 1]} : vector<8x256xf32> to vector<4x128xf32>
    %115 = arith.addf %113, %114 : vector<4x128xf32>
    %116 = tpu.concatenate %112, %115 in 0 : vector<4x128xf32>, vector<4x128xf32> -> vector<8x128xf32>
    %117 = vector.extract_strided_slice %116 {offsets = [0, 0], sizes = [8, 32], strides = [1, 1]} : vector<8x128xf32> to vector<8x32xf32>
    %118 = arith.negf %117 : vector<8x32xf32>
    %119 = math.exp %118 : vector<8x32xf32>
    %cst_22 = arith.constant 1.000000e+00 : f32
    %120 = vector.broadcast %cst_22 : f32 to vector<8x32xf32>
    %121 = arith.addf %120, %119 : vector<8x32xf32>
    %122 = arith.divf %120, %121 : vector<8x32xf32>
    %123 = vector.extract_strided_slice %116 {offsets = [0, 32], sizes = [8, 32], strides = [1, 1]} : vector<8x128xf32> to vector<8x32xf32>
    %124 = arith.negf %123 : vector<8x32xf32>
    %125 = math.exp %124 : vector<8x32xf32>
    %cst_23 = arith.constant 1.000000e+00 : f32
    %126 = vector.broadcast %cst_23 : f32 to vector<8x32xf32>
    %127 = arith.addf %126, %125 : vector<8x32xf32>
    %128 = arith.divf %126, %127 : vector<8x32xf32>
    %129 = vector.extract_strided_slice %116 {offsets = [0, 64], sizes = [8, 32], strides = [1, 1]} : vector<8x128xf32> to vector<8x32xf32>
    %130 = math.tanh %129 : vector<8x32xf32>
    %131 = vector.extract_strided_slice %116 {offsets = [0, 96], sizes = [8, 32], strides = [1, 1]} : vector<8x128xf32> to vector<8x32xf32>
    %132 = arith.negf %131 : vector<8x32xf32>
    %133 = math.exp %132 : vector<8x32xf32>
    %cst_24 = arith.constant 1.000000e+00 : f32
    %134 = vector.broadcast %cst_24 : f32 to vector<8x32xf32>
    %135 = arith.addf %134, %133 : vector<8x32xf32>
    %136 = arith.divf %134, %135 : vector<8x32xf32>
    %137 = arith.mulf %128, %102 : vector<8x32xf32>
    %138 = arith.mulf %122, %130 : vector<8x32xf32>
    %139 = arith.addf %137, %138 : vector<8x32xf32>
    %140 = math.tanh %139 : vector<8x32xf32>
    %141 = arith.mulf %136, %140 : vector<8x32xf32>
    %142 = vector.extract_strided_slice %4 {offsets = [0, 2], sizes = [8, 1], strides = [1, 1]} : vector<8x8xi32> to vector<8x1xi32>
    %143 = arith.cmpi slt, %142, %5 : vector<8x1xi32>
    %144 = vector.shape_cast %143 : vector<8x1xi1> to vector<8x1xi1>
    %145 = vector.broadcast %144 : vector<8x1xi1> to vector<8x32xi1>
    %146 = arith.select %145, %141, %99 : vector<8x32xi1>, vector<8x32xf32>
    %147 = vector.shape_cast %143 : vector<8x1xi1> to vector<8x1xi1>
    %148 = vector.broadcast %147 : vector<8x1xi1> to vector<8x32xi1>
    %149 = arith.select %148, %139, %102 : vector<8x32xi1>, vector<8x32xf32>
    %cst_25 = arith.constant 0.000000e+00 : f32
    %150 = vector.shape_cast %143 : vector<8x1xi1> to vector<8x1xi1>
    %151 = vector.broadcast %150 : vector<8x1xi1> to vector<8x32xi1>
    %152 = vector.broadcast %cst_25 : f32 to vector<8x32xf32>
    %153 = arith.select %151, %141, %152 : vector<8x32xi1>, vector<8x32xf32>
    %154 = vector.extract_strided_slice %153 {offsets = [0, 0], sizes = [4, 32], strides = [1, 1]} : vector<8x32xf32> to vector<4x32xf32>
    %155 = vector.extract_strided_slice %153 {offsets = [4, 0], sizes = [4, 32], strides = [1, 1]} : vector<8x32xf32> to vector<4x32xf32>
    %cst_26 = arith.constant dense<0.000000e+00> : vector<8x256xf32>
    %156 = tpu.matmul %146, %12, %cst_26 {dimension_numbers = #tpu.dot_dimension_numbers<[1], [0], [0], [1], [0, 0, 1, 1], [], []>} : vector<8x32xf32>, vector<32x256xf32>, vector<8x256xf32> -> vector<8x256xf32>
    %157 = vector.extract_strided_slice %11 {offsets = [12, 0], sizes = [4, 128], strides = [1, 1]} : vector<32x256xf32> to vector<4x128xf32>
    %158 = vector.extract_strided_slice %156 {offsets = [0, 0], sizes = [4, 128], strides = [1, 1]} : vector<8x256xf32> to vector<4x128xf32>
    %159 = arith.addf %157, %158 : vector<4x128xf32>
    %160 = vector.extract_strided_slice %11 {offsets = [16, 128], sizes = [4, 128], strides = [1, 1]} : vector<32x256xf32> to vector<4x128xf32>
    %161 = vector.extract_strided_slice %156 {offsets = [4, 128], sizes = [4, 128], strides = [1, 1]} : vector<8x256xf32> to vector<4x128xf32>
    %162 = arith.addf %160, %161 : vector<4x128xf32>
    %163 = tpu.concatenate %159, %162 in 0 : vector<4x128xf32>, vector<4x128xf32> -> vector<8x128xf32>
    %164 = vector.extract_strided_slice %163 {offsets = [0, 0], sizes = [8, 32], strides = [1, 1]} : vector<8x128xf32> to vector<8x32xf32>
    %165 = arith.negf %164 : vector<8x32xf32>
    %166 = math.exp %165 : vector<8x32xf32>
    %cst_27 = arith.constant 1.000000e+00 : f32
    %167 = vector.broadcast %cst_27 : f32 to vector<8x32xf32>
    %168 = arith.addf %167, %166 : vector<8x32xf32>
    %169 = arith.divf %167, %168 : vector<8x32xf32>
    %170 = vector.extract_strided_slice %163 {offsets = [0, 32], sizes = [8, 32], strides = [1, 1]} : vector<8x128xf32> to vector<8x32xf32>
    %171 = arith.negf %170 : vector<8x32xf32>
    %172 = math.exp %171 : vector<8x32xf32>
    %cst_28 = arith.constant 1.000000e+00 : f32
    %173 = vector.broadcast %cst_28 : f32 to vector<8x32xf32>
    %174 = arith.addf %173, %172 : vector<8x32xf32>
    %175 = arith.divf %173, %174 : vector<8x32xf32>
    %176 = vector.extract_strided_slice %163 {offsets = [0, 64], sizes = [8, 32], strides = [1, 1]} : vector<8x128xf32> to vector<8x32xf32>
    %177 = math.tanh %176 : vector<8x32xf32>
    %178 = vector.extract_strided_slice %163 {offsets = [0, 96], sizes = [8, 32], strides = [1, 1]} : vector<8x128xf32> to vector<8x32xf32>
    %179 = arith.negf %178 : vector<8x32xf32>
    %180 = math.exp %179 : vector<8x32xf32>
    %cst_29 = arith.constant 1.000000e+00 : f32
    %181 = vector.broadcast %cst_29 : f32 to vector<8x32xf32>
    %182 = arith.addf %181, %180 : vector<8x32xf32>
    %183 = arith.divf %181, %182 : vector<8x32xf32>
    %184 = arith.mulf %175, %149 : vector<8x32xf32>
    %185 = arith.mulf %169, %177 : vector<8x32xf32>
    %186 = arith.addf %184, %185 : vector<8x32xf32>
    %187 = math.tanh %186 : vector<8x32xf32>
    %188 = arith.mulf %183, %187 : vector<8x32xf32>
    %189 = vector.extract_strided_slice %4 {offsets = [0, 3], sizes = [8, 1], strides = [1, 1]} : vector<8x8xi32> to vector<8x1xi32>
    %190 = arith.cmpi slt, %189, %5 : vector<8x1xi32>
    %191 = vector.shape_cast %190 : vector<8x1xi1> to vector<8x1xi1>
    %192 = vector.broadcast %191 : vector<8x1xi1> to vector<8x32xi1>
    %193 = arith.select %192, %188, %146 : vector<8x32xi1>, vector<8x32xf32>
    %194 = vector.shape_cast %190 : vector<8x1xi1> to vector<8x1xi1>
    %195 = vector.broadcast %194 : vector<8x1xi1> to vector<8x32xi1>
    %196 = arith.select %195, %186, %149 : vector<8x32xi1>, vector<8x32xf32>
    %cst_30 = arith.constant 0.000000e+00 : f32
    %197 = vector.shape_cast %190 : vector<8x1xi1> to vector<8x1xi1>
    %198 = vector.broadcast %197 : vector<8x1xi1> to vector<8x32xi1>
    %199 = vector.broadcast %cst_30 : f32 to vector<8x32xf32>
    %200 = arith.select %198, %188, %199 : vector<8x32xi1>, vector<8x32xf32>
    %201 = vector.extract_strided_slice %200 {offsets = [0, 0], sizes = [4, 32], strides = [1, 1]} : vector<8x32xf32> to vector<4x32xf32>
    %202 = vector.extract_strided_slice %200 {offsets = [4, 0], sizes = [4, 32], strides = [1, 1]} : vector<8x32xf32> to vector<4x32xf32>
    %cst_31 = arith.constant dense<0.000000e+00> : vector<8x256xf32>
    %203 = tpu.matmul %193, %12, %cst_31 {dimension_numbers = #tpu.dot_dimension_numbers<[1], [0], [0], [1], [0, 0, 1, 1], [], []>} : vector<8x32xf32>, vector<32x256xf32>, vector<8x256xf32> -> vector<8x256xf32>
    %204 = vector.extract_strided_slice %11 {offsets = [16, 0], sizes = [4, 128], strides = [1, 1]} : vector<32x256xf32> to vector<4x128xf32>
    %205 = vector.extract_strided_slice %203 {offsets = [0, 0], sizes = [4, 128], strides = [1, 1]} : vector<8x256xf32> to vector<4x128xf32>
    %206 = arith.addf %204, %205 : vector<4x128xf32>
    %207 = vector.extract_strided_slice %11 {offsets = [12, 128], sizes = [4, 128], strides = [1, 1]} : vector<32x256xf32> to vector<4x128xf32>
    %208 = vector.extract_strided_slice %203 {offsets = [4, 128], sizes = [4, 128], strides = [1, 1]} : vector<8x256xf32> to vector<4x128xf32>
    %209 = arith.addf %207, %208 : vector<4x128xf32>
    %210 = tpu.concatenate %206, %209 in 0 : vector<4x128xf32>, vector<4x128xf32> -> vector<8x128xf32>
    %211 = vector.extract_strided_slice %210 {offsets = [0, 0], sizes = [8, 32], strides = [1, 1]} : vector<8x128xf32> to vector<8x32xf32>
    %212 = arith.negf %211 : vector<8x32xf32>
    %213 = math.exp %212 : vector<8x32xf32>
    %cst_32 = arith.constant 1.000000e+00 : f32
    %214 = vector.broadcast %cst_32 : f32 to vector<8x32xf32>
    %215 = arith.addf %214, %213 : vector<8x32xf32>
    %216 = arith.divf %214, %215 : vector<8x32xf32>
    %217 = vector.extract_strided_slice %210 {offsets = [0, 32], sizes = [8, 32], strides = [1, 1]} : vector<8x128xf32> to vector<8x32xf32>
    %218 = arith.negf %217 : vector<8x32xf32>
    %219 = math.exp %218 : vector<8x32xf32>
    %cst_33 = arith.constant 1.000000e+00 : f32
    %220 = vector.broadcast %cst_33 : f32 to vector<8x32xf32>
    %221 = arith.addf %220, %219 : vector<8x32xf32>
    %222 = arith.divf %220, %221 : vector<8x32xf32>
    %223 = vector.extract_strided_slice %210 {offsets = [0, 64], sizes = [8, 32], strides = [1, 1]} : vector<8x128xf32> to vector<8x32xf32>
    %224 = math.tanh %223 : vector<8x32xf32>
    %225 = vector.extract_strided_slice %210 {offsets = [0, 96], sizes = [8, 32], strides = [1, 1]} : vector<8x128xf32> to vector<8x32xf32>
    %226 = arith.negf %225 : vector<8x32xf32>
    %227 = math.exp %226 : vector<8x32xf32>
    %cst_34 = arith.constant 1.000000e+00 : f32
    %228 = vector.broadcast %cst_34 : f32 to vector<8x32xf32>
    %229 = arith.addf %228, %227 : vector<8x32xf32>
    %230 = arith.divf %228, %229 : vector<8x32xf32>
    %231 = arith.mulf %222, %196 : vector<8x32xf32>
    %232 = arith.mulf %216, %224 : vector<8x32xf32>
    %233 = arith.addf %231, %232 : vector<8x32xf32>
    %234 = math.tanh %233 : vector<8x32xf32>
    %235 = arith.mulf %230, %234 : vector<8x32xf32>
    %236 = vector.extract_strided_slice %4 {offsets = [0, 4], sizes = [8, 1], strides = [1, 1]} : vector<8x8xi32> to vector<8x1xi32>
    %237 = arith.cmpi slt, %236, %5 : vector<8x1xi32>
    %238 = vector.shape_cast %237 : vector<8x1xi1> to vector<8x1xi1>
    %239 = vector.broadcast %238 : vector<8x1xi1> to vector<8x32xi1>
    %240 = arith.select %239, %235, %193 : vector<8x32xi1>, vector<8x32xf32>
    %241 = vector.shape_cast %237 : vector<8x1xi1> to vector<8x1xi1>
    %242 = vector.broadcast %241 : vector<8x1xi1> to vector<8x32xi1>
    %243 = arith.select %242, %233, %196 : vector<8x32xi1>, vector<8x32xf32>
    %cst_35 = arith.constant 0.000000e+00 : f32
    %244 = vector.shape_cast %237 : vector<8x1xi1> to vector<8x1xi1>
    %245 = vector.broadcast %244 : vector<8x1xi1> to vector<8x32xi1>
    %246 = vector.broadcast %cst_35 : f32 to vector<8x32xf32>
    %247 = arith.select %245, %235, %246 : vector<8x32xi1>, vector<8x32xf32>
    %248 = vector.extract_strided_slice %247 {offsets = [0, 0], sizes = [4, 32], strides = [1, 1]} : vector<8x32xf32> to vector<4x32xf32>
    %249 = vector.extract_strided_slice %247 {offsets = [4, 0], sizes = [4, 32], strides = [1, 1]} : vector<8x32xf32> to vector<4x32xf32>
    %cst_36 = arith.constant dense<0.000000e+00> : vector<8x256xf32>
    %250 = tpu.matmul %240, %12, %cst_36 {dimension_numbers = #tpu.dot_dimension_numbers<[1], [0], [0], [1], [0, 0, 1, 1], [], []>} : vector<8x32xf32>, vector<32x256xf32>, vector<8x256xf32> -> vector<8x256xf32>
    %251 = vector.extract_strided_slice %11 {offsets = [20, 0], sizes = [4, 128], strides = [1, 1]} : vector<32x256xf32> to vector<4x128xf32>
    %252 = vector.extract_strided_slice %250 {offsets = [0, 0], sizes = [4, 128], strides = [1, 1]} : vector<8x256xf32> to vector<4x128xf32>
    %253 = arith.addf %251, %252 : vector<4x128xf32>
    %254 = vector.extract_strided_slice %11 {offsets = [8, 128], sizes = [4, 128], strides = [1, 1]} : vector<32x256xf32> to vector<4x128xf32>
    %255 = vector.extract_strided_slice %250 {offsets = [4, 128], sizes = [4, 128], strides = [1, 1]} : vector<8x256xf32> to vector<4x128xf32>
    %256 = arith.addf %254, %255 : vector<4x128xf32>
    %257 = tpu.concatenate %253, %256 in 0 : vector<4x128xf32>, vector<4x128xf32> -> vector<8x128xf32>
    %258 = vector.extract_strided_slice %257 {offsets = [0, 0], sizes = [8, 32], strides = [1, 1]} : vector<8x128xf32> to vector<8x32xf32>
    %259 = arith.negf %258 : vector<8x32xf32>
    %260 = math.exp %259 : vector<8x32xf32>
    %cst_37 = arith.constant 1.000000e+00 : f32
    %261 = vector.broadcast %cst_37 : f32 to vector<8x32xf32>
    %262 = arith.addf %261, %260 : vector<8x32xf32>
    %263 = arith.divf %261, %262 : vector<8x32xf32>
    %264 = vector.extract_strided_slice %257 {offsets = [0, 32], sizes = [8, 32], strides = [1, 1]} : vector<8x128xf32> to vector<8x32xf32>
    %265 = arith.negf %264 : vector<8x32xf32>
    %266 = math.exp %265 : vector<8x32xf32>
    %cst_38 = arith.constant 1.000000e+00 : f32
    %267 = vector.broadcast %cst_38 : f32 to vector<8x32xf32>
    %268 = arith.addf %267, %266 : vector<8x32xf32>
    %269 = arith.divf %267, %268 : vector<8x32xf32>
    %270 = vector.extract_strided_slice %257 {offsets = [0, 64], sizes = [8, 32], strides = [1, 1]} : vector<8x128xf32> to vector<8x32xf32>
    %271 = math.tanh %270 : vector<8x32xf32>
    %272 = vector.extract_strided_slice %257 {offsets = [0, 96], sizes = [8, 32], strides = [1, 1]} : vector<8x128xf32> to vector<8x32xf32>
    %273 = arith.negf %272 : vector<8x32xf32>
    %274 = math.exp %273 : vector<8x32xf32>
    %cst_39 = arith.constant 1.000000e+00 : f32
    %275 = vector.broadcast %cst_39 : f32 to vector<8x32xf32>
    %276 = arith.addf %275, %274 : vector<8x32xf32>
    %277 = arith.divf %275, %276 : vector<8x32xf32>
    %278 = arith.mulf %269, %243 : vector<8x32xf32>
    %279 = arith.mulf %263, %271 : vector<8x32xf32>
    %280 = arith.addf %278, %279 : vector<8x32xf32>
    %281 = math.tanh %280 : vector<8x32xf32>
    %282 = arith.mulf %277, %281 : vector<8x32xf32>
    %283 = vector.extract_strided_slice %4 {offsets = [0, 5], sizes = [8, 1], strides = [1, 1]} : vector<8x8xi32> to vector<8x1xi32>
    %284 = arith.cmpi slt, %283, %5 : vector<8x1xi32>
    %285 = vector.shape_cast %284 : vector<8x1xi1> to vector<8x1xi1>
    %286 = vector.broadcast %285 : vector<8x1xi1> to vector<8x32xi1>
    %287 = arith.select %286, %282, %240 : vector<8x32xi1>, vector<8x32xf32>
    %288 = vector.shape_cast %284 : vector<8x1xi1> to vector<8x1xi1>
    %289 = vector.broadcast %288 : vector<8x1xi1> to vector<8x32xi1>
    %290 = arith.select %289, %280, %243 : vector<8x32xi1>, vector<8x32xf32>
    %cst_40 = arith.constant 0.000000e+00 : f32
    %291 = vector.shape_cast %284 : vector<8x1xi1> to vector<8x1xi1>
    %292 = vector.broadcast %291 : vector<8x1xi1> to vector<8x32xi1>
    %293 = vector.broadcast %cst_40 : f32 to vector<8x32xf32>
    %294 = arith.select %292, %282, %293 : vector<8x32xi1>, vector<8x32xf32>
    %295 = vector.extract_strided_slice %294 {offsets = [0, 0], sizes = [4, 32], strides = [1, 1]} : vector<8x32xf32> to vector<4x32xf32>
    %296 = vector.extract_strided_slice %294 {offsets = [4, 0], sizes = [4, 32], strides = [1, 1]} : vector<8x32xf32> to vector<4x32xf32>
    %cst_41 = arith.constant dense<0.000000e+00> : vector<8x256xf32>
    %297 = tpu.matmul %287, %12, %cst_41 {dimension_numbers = #tpu.dot_dimension_numbers<[1], [0], [0], [1], [0, 0, 1, 1], [], []>} : vector<8x32xf32>, vector<32x256xf32>, vector<8x256xf32> -> vector<8x256xf32>
    %298 = vector.extract_strided_slice %11 {offsets = [24, 0], sizes = [4, 128], strides = [1, 1]} : vector<32x256xf32> to vector<4x128xf32>
    %299 = vector.extract_strided_slice %297 {offsets = [0, 0], sizes = [4, 128], strides = [1, 1]} : vector<8x256xf32> to vector<4x128xf32>
    %300 = arith.addf %298, %299 : vector<4x128xf32>
    %301 = vector.extract_strided_slice %11 {offsets = [4, 128], sizes = [4, 128], strides = [1, 1]} : vector<32x256xf32> to vector<4x128xf32>
    %302 = vector.extract_strided_slice %297 {offsets = [4, 128], sizes = [4, 128], strides = [1, 1]} : vector<8x256xf32> to vector<4x128xf32>
    %303 = arith.addf %301, %302 : vector<4x128xf32>
    %304 = tpu.concatenate %300, %303 in 0 : vector<4x128xf32>, vector<4x128xf32> -> vector<8x128xf32>
    %305 = vector.extract_strided_slice %304 {offsets = [0, 0], sizes = [8, 32], strides = [1, 1]} : vector<8x128xf32> to vector<8x32xf32>
    %306 = arith.negf %305 : vector<8x32xf32>
    %307 = math.exp %306 : vector<8x32xf32>
    %cst_42 = arith.constant 1.000000e+00 : f32
    %308 = vector.broadcast %cst_42 : f32 to vector<8x32xf32>
    %309 = arith.addf %308, %307 : vector<8x32xf32>
    %310 = arith.divf %308, %309 : vector<8x32xf32>
    %311 = vector.extract_strided_slice %304 {offsets = [0, 32], sizes = [8, 32], strides = [1, 1]} : vector<8x128xf32> to vector<8x32xf32>
    %312 = arith.negf %311 : vector<8x32xf32>
    %313 = math.exp %312 : vector<8x32xf32>
    %cst_43 = arith.constant 1.000000e+00 : f32
    %314 = vector.broadcast %cst_43 : f32 to vector<8x32xf32>
    %315 = arith.addf %314, %313 : vector<8x32xf32>
    %316 = arith.divf %314, %315 : vector<8x32xf32>
    %317 = vector.extract_strided_slice %304 {offsets = [0, 64], sizes = [8, 32], strides = [1, 1]} : vector<8x128xf32> to vector<8x32xf32>
    %318 = math.tanh %317 : vector<8x32xf32>
    %319 = vector.extract_strided_slice %304 {offsets = [0, 96], sizes = [8, 32], strides = [1, 1]} : vector<8x128xf32> to vector<8x32xf32>
    %320 = arith.negf %319 : vector<8x32xf32>
    %321 = math.exp %320 : vector<8x32xf32>
    %cst_44 = arith.constant 1.000000e+00 : f32
    %322 = vector.broadcast %cst_44 : f32 to vector<8x32xf32>
    %323 = arith.addf %322, %321 : vector<8x32xf32>
    %324 = arith.divf %322, %323 : vector<8x32xf32>
    %325 = arith.mulf %316, %290 : vector<8x32xf32>
    %326 = arith.mulf %310, %318 : vector<8x32xf32>
    %327 = arith.addf %325, %326 : vector<8x32xf32>
    %328 = math.tanh %327 : vector<8x32xf32>
    %329 = arith.mulf %324, %328 : vector<8x32xf32>
    %330 = vector.extract_strided_slice %4 {offsets = [0, 6], sizes = [8, 1], strides = [1, 1]} : vector<8x8xi32> to vector<8x1xi32>
    %331 = arith.cmpi slt, %330, %5 : vector<8x1xi32>
    %332 = vector.shape_cast %331 : vector<8x1xi1> to vector<8x1xi1>
    %333 = vector.broadcast %332 : vector<8x1xi1> to vector<8x32xi1>
    %334 = arith.select %333, %329, %287 : vector<8x32xi1>, vector<8x32xf32>
    %335 = vector.shape_cast %331 : vector<8x1xi1> to vector<8x1xi1>
    %336 = vector.broadcast %335 : vector<8x1xi1> to vector<8x32xi1>
    %337 = arith.select %336, %327, %290 : vector<8x32xi1>, vector<8x32xf32>
    %cst_45 = arith.constant 0.000000e+00 : f32
    %338 = vector.shape_cast %331 : vector<8x1xi1> to vector<8x1xi1>
    %339 = vector.broadcast %338 : vector<8x1xi1> to vector<8x32xi1>
    %340 = vector.broadcast %cst_45 : f32 to vector<8x32xf32>
    %341 = arith.select %339, %329, %340 : vector<8x32xi1>, vector<8x32xf32>
    %342 = vector.extract_strided_slice %341 {offsets = [0, 0], sizes = [4, 32], strides = [1, 1]} : vector<8x32xf32> to vector<4x32xf32>
    %343 = vector.extract_strided_slice %341 {offsets = [4, 0], sizes = [4, 32], strides = [1, 1]} : vector<8x32xf32> to vector<4x32xf32>
    %cst_46 = arith.constant dense<0.000000e+00> : vector<8x256xf32>
    %344 = tpu.matmul %334, %12, %cst_46 {dimension_numbers = #tpu.dot_dimension_numbers<[1], [0], [0], [1], [0, 0, 1, 1], [], []>} : vector<8x32xf32>, vector<32x256xf32>, vector<8x256xf32> -> vector<8x256xf32>
    %345 = vector.extract_strided_slice %11 {offsets = [28, 0], sizes = [4, 128], strides = [1, 1]} : vector<32x256xf32> to vector<4x128xf32>
    %346 = vector.extract_strided_slice %344 {offsets = [0, 0], sizes = [4, 128], strides = [1, 1]} : vector<8x256xf32> to vector<4x128xf32>
    %347 = arith.addf %345, %346 : vector<4x128xf32>
    %348 = vector.extract_strided_slice %11 {offsets = [0, 128], sizes = [4, 128], strides = [1, 1]} : vector<32x256xf32> to vector<4x128xf32>
    %349 = vector.extract_strided_slice %344 {offsets = [4, 128], sizes = [4, 128], strides = [1, 1]} : vector<8x256xf32> to vector<4x128xf32>
    %350 = arith.addf %348, %349 : vector<4x128xf32>
    %351 = tpu.concatenate %347, %350 in 0 : vector<4x128xf32>, vector<4x128xf32> -> vector<8x128xf32>
    %352 = vector.extract_strided_slice %351 {offsets = [0, 0], sizes = [8, 32], strides = [1, 1]} : vector<8x128xf32> to vector<8x32xf32>
    %353 = arith.negf %352 : vector<8x32xf32>
    %354 = math.exp %353 : vector<8x32xf32>
    %cst_47 = arith.constant 1.000000e+00 : f32
    %355 = vector.broadcast %cst_47 : f32 to vector<8x32xf32>
    %356 = arith.addf %355, %354 : vector<8x32xf32>
    %357 = arith.divf %355, %356 : vector<8x32xf32>
    %358 = vector.extract_strided_slice %351 {offsets = [0, 32], sizes = [8, 32], strides = [1, 1]} : vector<8x128xf32> to vector<8x32xf32>
    %359 = arith.negf %358 : vector<8x32xf32>
    %360 = math.exp %359 : vector<8x32xf32>
    %cst_48 = arith.constant 1.000000e+00 : f32
    %361 = vector.broadcast %cst_48 : f32 to vector<8x32xf32>
    %362 = arith.addf %361, %360 : vector<8x32xf32>
    %363 = arith.divf %361, %362 : vector<8x32xf32>
    %364 = vector.extract_strided_slice %351 {offsets = [0, 64], sizes = [8, 32], strides = [1, 1]} : vector<8x128xf32> to vector<8x32xf32>
    %365 = math.tanh %364 : vector<8x32xf32>
    %366 = vector.extract_strided_slice %351 {offsets = [0, 96], sizes = [8, 32], strides = [1, 1]} : vector<8x128xf32> to vector<8x32xf32>
    %367 = arith.negf %366 : vector<8x32xf32>
    %368 = math.exp %367 : vector<8x32xf32>
    %cst_49 = arith.constant 1.000000e+00 : f32
    %369 = vector.broadcast %cst_49 : f32 to vector<8x32xf32>
    %370 = arith.addf %369, %368 : vector<8x32xf32>
    %371 = arith.divf %369, %370 : vector<8x32xf32>
    %372 = arith.mulf %363, %337 : vector<8x32xf32>
    %373 = arith.mulf %357, %365 : vector<8x32xf32>
    %374 = arith.addf %372, %373 : vector<8x32xf32>
    %375 = math.tanh %374 : vector<8x32xf32>
    %376 = arith.mulf %371, %375 : vector<8x32xf32>
    %377 = vector.extract_strided_slice %4 {offsets = [0, 7], sizes = [8, 1], strides = [1, 1]} : vector<8x8xi32> to vector<8x1xi32>
    %378 = arith.cmpi slt, %377, %5 : vector<8x1xi32>
    %cst_50 = arith.constant 0.000000e+00 : f32
    %379 = vector.shape_cast %378 : vector<8x1xi1> to vector<8x1xi1>
    %380 = vector.broadcast %379 : vector<8x1xi1> to vector<8x32xi1>
    %381 = vector.broadcast %cst_50 : f32 to vector<8x32xf32>
    %382 = arith.select %380, %376, %381 : vector<8x32xi1>, vector<8x32xf32>
    %383 = vector.extract_strided_slice %382 {offsets = [0, 0], sizes = [4, 32], strides = [1, 1]} : vector<8x32xf32> to vector<4x32xf32>
    %384 = vector.extract_strided_slice %382 {offsets = [4, 0], sizes = [4, 32], strides = [1, 1]} : vector<8x32xf32> to vector<4x32xf32>
    %385 = tpu.concatenate %60, %384 in 1 : vector<4x32xf32>, vector<4x32xf32> -> vector<4x64xf32>
    %386 = tpu.concatenate %107, %343 in 1 : vector<4x32xf32>, vector<4x32xf32> -> vector<4x64xf32>
    %387 = tpu.concatenate %154, %296 in 1 : vector<4x32xf32>, vector<4x32xf32> -> vector<4x64xf32>
    %388 = tpu.concatenate %201, %249 in 1 : vector<4x32xf32>, vector<4x32xf32> -> vector<4x64xf32>
    %389 = tpu.concatenate %248, %202 in 1 : vector<4x32xf32>, vector<4x32xf32> -> vector<4x64xf32>
    %390 = tpu.concatenate %295, %155 in 1 : vector<4x32xf32>, vector<4x32xf32> -> vector<4x64xf32>
    %391 = tpu.concatenate %342, %108 in 1 : vector<4x32xf32>, vector<4x32xf32> -> vector<4x64xf32>
    %392 = tpu.concatenate %383, %61 in 1 : vector<4x32xf32>, vector<4x32xf32> -> vector<4x64xf32>
    %393 = tpu.concatenate %385, %386, %387, %388, %389, %390, %391, %392 in 0 : vector<4x64xf32>, vector<4x64xf32>, vector<4x64xf32>, vector<4x64xf32>, vector<4x64xf32>, vector<4x64xf32>, vector<4x64xf32>, vector<4x64xf32> -> vector<32x64xf32>
    %c0_51 = arith.constant 0 : index
    %c0_52 = arith.constant 0 : index
    %394 = vector.load %arg5[%c0_51, %c0_52] : memref<64x256xf32, #tpu.memory_space<vmem>>, vector<64x256xf32>
    %cst_53 = arith.constant dense<0.000000e+00> : vector<32x256xf32>
    %395 = tpu.matmul %393, %394, %cst_53 {dimension_numbers = #tpu.dot_dimension_numbers<[1], [0], [0], [1], [0, 0, 1, 1], [], []>} : vector<32x64xf32>, vector<64x256xf32>, vector<32x256xf32> -> vector<32x256xf32>
    %c0_54 = arith.constant 0 : index
    %c0_55 = arith.constant 0 : index
    %396 = vector.load %arg7[%c0_54, %c0_55] : memref<1x256xf32, #tpu.memory_space<vmem>>, vector<1x256xf32>
    %397 = vector.broadcast %396 : vector<1x256xf32> to vector<32x256xf32>
    %398 = arith.addf %395, %397 : vector<32x256xf32>
    %c0_56 = arith.constant 0 : index
    %c0_57 = arith.constant 0 : index
    %399 = vector.load %arg6[%c0_56, %c0_57] : memref<32x256xf32, #tpu.memory_space<vmem>>, vector<32x256xf32>
    %cst_58 = arith.constant 0.000000e+00 : f32
    %400 = vector.broadcast %cst_58 : f32 to vector<8x32xf32>
    %cst_59 = arith.constant 0.000000e+00 : f32
    %401 = vector.broadcast %cst_59 : f32 to vector<8x32xf32>
    %cst_60 = arith.constant 0.000000e+00 : f32
    %402 = vector.broadcast %cst_60 : f32 to vector<8x32xf32>
    %cst_61 = arith.constant dense<0.000000e+00> : vector<8x256xf32>
    %403 = tpu.matmul %400, %399, %cst_61 {dimension_numbers = #tpu.dot_dimension_numbers<[1], [0], [0], [1], [0, 0, 1, 1], [], []>} : vector<8x32xf32>, vector<32x256xf32>, vector<8x256xf32> -> vector<8x256xf32>
    %404 = vector.extract_strided_slice %398 {offsets = [0, 0], sizes = [4, 128], strides = [1, 1]} : vector<32x256xf32> to vector<4x128xf32>
    %405 = vector.extract_strided_slice %403 {offsets = [0, 0], sizes = [4, 128], strides = [1, 1]} : vector<8x256xf32> to vector<4x128xf32>
    %406 = arith.addf %404, %405 : vector<4x128xf32>
    %407 = vector.extract_strided_slice %398 {offsets = [28, 128], sizes = [4, 128], strides = [1, 1]} : vector<32x256xf32> to vector<4x128xf32>
    %408 = vector.extract_strided_slice %403 {offsets = [4, 128], sizes = [4, 128], strides = [1, 1]} : vector<8x256xf32> to vector<4x128xf32>
    %409 = arith.addf %407, %408 : vector<4x128xf32>
    %410 = tpu.concatenate %406, %409 in 0 : vector<4x128xf32>, vector<4x128xf32> -> vector<8x128xf32>
    %411 = vector.extract_strided_slice %410 {offsets = [0, 0], sizes = [8, 32], strides = [1, 1]} : vector<8x128xf32> to vector<8x32xf32>
    %412 = arith.negf %411 : vector<8x32xf32>
    %413 = math.exp %412 : vector<8x32xf32>
    %cst_62 = arith.constant 1.000000e+00 : f32
    %414 = vector.broadcast %cst_62 : f32 to vector<8x32xf32>
    %415 = arith.addf %414, %413 : vector<8x32xf32>
    %416 = arith.divf %414, %415 : vector<8x32xf32>
    %417 = vector.extract_strided_slice %410 {offsets = [0, 32], sizes = [8, 32], strides = [1, 1]} : vector<8x128xf32> to vector<8x32xf32>
    %418 = arith.negf %417 : vector<8x32xf32>
    %419 = math.exp %418 : vector<8x32xf32>
    %cst_63 = arith.constant 1.000000e+00 : f32
    %420 = vector.broadcast %cst_63 : f32 to vector<8x32xf32>
    %421 = arith.addf %420, %419 : vector<8x32xf32>
    %422 = arith.divf %420, %421 : vector<8x32xf32>
    %423 = vector.extract_strided_slice %410 {offsets = [0, 64], sizes = [8, 32], strides = [1, 1]} : vector<8x128xf32> to vector<8x32xf32>
    %424 = math.tanh %423 : vector<8x32xf32>
    %425 = vector.extract_strided_slice %410 {offsets = [0, 96], sizes = [8, 32], strides = [1, 1]} : vector<8x128xf32> to vector<8x32xf32>
    %426 = arith.negf %425 : vector<8x32xf32>
    %427 = math.exp %426 : vector<8x32xf32>
    %cst_64 = arith.constant 1.000000e+00 : f32
    %428 = vector.broadcast %cst_64 : f32 to vector<8x32xf32>
    %429 = arith.addf %428, %427 : vector<8x32xf32>
    %430 = arith.divf %428, %429 : vector<8x32xf32>
    %431 = arith.mulf %422, %401 : vector<8x32xf32>
    %432 = arith.mulf %416, %424 : vector<8x32xf32>
    %433 = arith.addf %431, %432 : vector<8x32xf32>
    %434 = math.tanh %433 : vector<8x32xf32>
    %435 = arith.mulf %430, %434 : vector<8x32xf32>
    %436 = vector.extract_strided_slice %4 {offsets = [0, 0], sizes = [8, 1], strides = [1, 1]} : vector<8x8xi32> to vector<8x1xi32>
    %437 = arith.cmpi slt, %436, %5 : vector<8x1xi32>
    %438 = vector.shape_cast %437 : vector<8x1xi1> to vector<8x1xi1>
    %439 = vector.broadcast %438 : vector<8x1xi1> to vector<8x32xi1>
    %440 = arith.select %439, %435, %400 : vector<8x32xi1>, vector<8x32xf32>
    %441 = vector.shape_cast %437 : vector<8x1xi1> to vector<8x1xi1>
    %442 = vector.broadcast %441 : vector<8x1xi1> to vector<8x32xi1>
    %443 = arith.select %442, %433, %401 : vector<8x32xi1>, vector<8x32xf32>
    %cst_65 = arith.constant 0.000000e+00 : f32
    %444 = vector.shape_cast %437 : vector<8x1xi1> to vector<8x1xi1>
    %445 = vector.broadcast %444 : vector<8x1xi1> to vector<8x32xi1>
    %446 = vector.broadcast %cst_65 : f32 to vector<8x32xf32>
    %447 = arith.select %445, %435, %446 : vector<8x32xi1>, vector<8x32xf32>
    %448 = arith.addf %402, %447 : vector<8x32xf32>
    %cst_66 = arith.constant dense<0.000000e+00> : vector<8x256xf32>
    %449 = tpu.matmul %440, %399, %cst_66 {dimension_numbers = #tpu.dot_dimension_numbers<[1], [0], [0], [1], [0, 0, 1, 1], [], []>} : vector<8x32xf32>, vector<32x256xf32>, vector<8x256xf32> -> vector<8x256xf32>
    %450 = vector.extract_strided_slice %398 {offsets = [4, 0], sizes = [4, 128], strides = [1, 1]} : vector<32x256xf32> to vector<4x128xf32>
    %451 = vector.extract_strided_slice %449 {offsets = [0, 0], sizes = [4, 128], strides = [1, 1]} : vector<8x256xf32> to vector<4x128xf32>
    %452 = arith.addf %450, %451 : vector<4x128xf32>
    %453 = vector.extract_strided_slice %398 {offsets = [24, 128], sizes = [4, 128], strides = [1, 1]} : vector<32x256xf32> to vector<4x128xf32>
    %454 = vector.extract_strided_slice %449 {offsets = [4, 128], sizes = [4, 128], strides = [1, 1]} : vector<8x256xf32> to vector<4x128xf32>
    %455 = arith.addf %453, %454 : vector<4x128xf32>
    %456 = tpu.concatenate %452, %455 in 0 : vector<4x128xf32>, vector<4x128xf32> -> vector<8x128xf32>
    %457 = vector.extract_strided_slice %456 {offsets = [0, 0], sizes = [8, 32], strides = [1, 1]} : vector<8x128xf32> to vector<8x32xf32>
    %458 = arith.negf %457 : vector<8x32xf32>
    %459 = math.exp %458 : vector<8x32xf32>
    %cst_67 = arith.constant 1.000000e+00 : f32
    %460 = vector.broadcast %cst_67 : f32 to vector<8x32xf32>
    %461 = arith.addf %460, %459 : vector<8x32xf32>
    %462 = arith.divf %460, %461 : vector<8x32xf32>
    %463 = vector.extract_strided_slice %456 {offsets = [0, 32], sizes = [8, 32], strides = [1, 1]} : vector<8x128xf32> to vector<8x32xf32>
    %464 = arith.negf %463 : vector<8x32xf32>
    %465 = math.exp %464 : vector<8x32xf32>
    %cst_68 = arith.constant 1.000000e+00 : f32
    %466 = vector.broadcast %cst_68 : f32 to vector<8x32xf32>
    %467 = arith.addf %466, %465 : vector<8x32xf32>
    %468 = arith.divf %466, %467 : vector<8x32xf32>
    %469 = vector.extract_strided_slice %456 {offsets = [0, 64], sizes = [8, 32], strides = [1, 1]} : vector<8x128xf32> to vector<8x32xf32>
    %470 = math.tanh %469 : vector<8x32xf32>
    %471 = vector.extract_strided_slice %456 {offsets = [0, 96], sizes = [8, 32], strides = [1, 1]} : vector<8x128xf32> to vector<8x32xf32>
    %472 = arith.negf %471 : vector<8x32xf32>
    %473 = math.exp %472 : vector<8x32xf32>
    %cst_69 = arith.constant 1.000000e+00 : f32
    %474 = vector.broadcast %cst_69 : f32 to vector<8x32xf32>
    %475 = arith.addf %474, %473 : vector<8x32xf32>
    %476 = arith.divf %474, %475 : vector<8x32xf32>
    %477 = arith.mulf %468, %443 : vector<8x32xf32>
    %478 = arith.mulf %462, %470 : vector<8x32xf32>
    %479 = arith.addf %477, %478 : vector<8x32xf32>
    %480 = math.tanh %479 : vector<8x32xf32>
    %481 = arith.mulf %476, %480 : vector<8x32xf32>
    %482 = vector.extract_strided_slice %4 {offsets = [0, 1], sizes = [8, 1], strides = [1, 1]} : vector<8x8xi32> to vector<8x1xi32>
    %483 = arith.cmpi slt, %482, %5 : vector<8x1xi32>
    %484 = vector.shape_cast %483 : vector<8x1xi1> to vector<8x1xi1>
    %485 = vector.broadcast %484 : vector<8x1xi1> to vector<8x32xi1>
    %486 = arith.select %485, %481, %440 : vector<8x32xi1>, vector<8x32xf32>
    %487 = vector.shape_cast %483 : vector<8x1xi1> to vector<8x1xi1>
    %488 = vector.broadcast %487 : vector<8x1xi1> to vector<8x32xi1>
    %489 = arith.select %488, %479, %443 : vector<8x32xi1>, vector<8x32xf32>
    %cst_70 = arith.constant 0.000000e+00 : f32
    %490 = vector.shape_cast %483 : vector<8x1xi1> to vector<8x1xi1>
    %491 = vector.broadcast %490 : vector<8x1xi1> to vector<8x32xi1>
    %492 = vector.broadcast %cst_70 : f32 to vector<8x32xf32>
    %493 = arith.select %491, %481, %492 : vector<8x32xi1>, vector<8x32xf32>
    %494 = arith.addf %448, %493 : vector<8x32xf32>
    %cst_71 = arith.constant dense<0.000000e+00> : vector<8x256xf32>
    %495 = tpu.matmul %486, %399, %cst_71 {dimension_numbers = #tpu.dot_dimension_numbers<[1], [0], [0], [1], [0, 0, 1, 1], [], []>} : vector<8x32xf32>, vector<32x256xf32>, vector<8x256xf32> -> vector<8x256xf32>
    %496 = vector.extract_strided_slice %398 {offsets = [8, 0], sizes = [4, 128], strides = [1, 1]} : vector<32x256xf32> to vector<4x128xf32>
    %497 = vector.extract_strided_slice %495 {offsets = [0, 0], sizes = [4, 128], strides = [1, 1]} : vector<8x256xf32> to vector<4x128xf32>
    %498 = arith.addf %496, %497 : vector<4x128xf32>
    %499 = vector.extract_strided_slice %398 {offsets = [20, 128], sizes = [4, 128], strides = [1, 1]} : vector<32x256xf32> to vector<4x128xf32>
    %500 = vector.extract_strided_slice %495 {offsets = [4, 128], sizes = [4, 128], strides = [1, 1]} : vector<8x256xf32> to vector<4x128xf32>
    %501 = arith.addf %499, %500 : vector<4x128xf32>
    %502 = tpu.concatenate %498, %501 in 0 : vector<4x128xf32>, vector<4x128xf32> -> vector<8x128xf32>
    %503 = vector.extract_strided_slice %502 {offsets = [0, 0], sizes = [8, 32], strides = [1, 1]} : vector<8x128xf32> to vector<8x32xf32>
    %504 = arith.negf %503 : vector<8x32xf32>
    %505 = math.exp %504 : vector<8x32xf32>
    %cst_72 = arith.constant 1.000000e+00 : f32
    %506 = vector.broadcast %cst_72 : f32 to vector<8x32xf32>
    %507 = arith.addf %506, %505 : vector<8x32xf32>
    %508 = arith.divf %506, %507 : vector<8x32xf32>
    %509 = vector.extract_strided_slice %502 {offsets = [0, 32], sizes = [8, 32], strides = [1, 1]} : vector<8x128xf32> to vector<8x32xf32>
    %510 = arith.negf %509 : vector<8x32xf32>
    %511 = math.exp %510 : vector<8x32xf32>
    %cst_73 = arith.constant 1.000000e+00 : f32
    %512 = vector.broadcast %cst_73 : f32 to vector<8x32xf32>
    %513 = arith.addf %512, %511 : vector<8x32xf32>
    %514 = arith.divf %512, %513 : vector<8x32xf32>
    %515 = vector.extract_strided_slice %502 {offsets = [0, 64], sizes = [8, 32], strides = [1, 1]} : vector<8x128xf32> to vector<8x32xf32>
    %516 = math.tanh %515 : vector<8x32xf32>
    %517 = vector.extract_strided_slice %502 {offsets = [0, 96], sizes = [8, 32], strides = [1, 1]} : vector<8x128xf32> to vector<8x32xf32>
    %518 = arith.negf %517 : vector<8x32xf32>
    %519 = math.exp %518 : vector<8x32xf32>
    %cst_74 = arith.constant 1.000000e+00 : f32
    %520 = vector.broadcast %cst_74 : f32 to vector<8x32xf32>
    %521 = arith.addf %520, %519 : vector<8x32xf32>
    %522 = arith.divf %520, %521 : vector<8x32xf32>
    %523 = arith.mulf %514, %489 : vector<8x32xf32>
    %524 = arith.mulf %508, %516 : vector<8x32xf32>
    %525 = arith.addf %523, %524 : vector<8x32xf32>
    %526 = math.tanh %525 : vector<8x32xf32>
    %527 = arith.mulf %522, %526 : vector<8x32xf32>
    %528 = vector.extract_strided_slice %4 {offsets = [0, 2], sizes = [8, 1], strides = [1, 1]} : vector<8x8xi32> to vector<8x1xi32>
    %529 = arith.cmpi slt, %528, %5 : vector<8x1xi32>
    %530 = vector.shape_cast %529 : vector<8x1xi1> to vector<8x1xi1>
    %531 = vector.broadcast %530 : vector<8x1xi1> to vector<8x32xi1>
    %532 = arith.select %531, %527, %486 : vector<8x32xi1>, vector<8x32xf32>
    %533 = vector.shape_cast %529 : vector<8x1xi1> to vector<8x1xi1>
    %534 = vector.broadcast %533 : vector<8x1xi1> to vector<8x32xi1>
    %535 = arith.select %534, %525, %489 : vector<8x32xi1>, vector<8x32xf32>
    %cst_75 = arith.constant 0.000000e+00 : f32
    %536 = vector.shape_cast %529 : vector<8x1xi1> to vector<8x1xi1>
    %537 = vector.broadcast %536 : vector<8x1xi1> to vector<8x32xi1>
    %538 = vector.broadcast %cst_75 : f32 to vector<8x32xf32>
    %539 = arith.select %537, %527, %538 : vector<8x32xi1>, vector<8x32xf32>
    %540 = arith.addf %494, %539 : vector<8x32xf32>
    %cst_76 = arith.constant dense<0.000000e+00> : vector<8x256xf32>
    %541 = tpu.matmul %532, %399, %cst_76 {dimension_numbers = #tpu.dot_dimension_numbers<[1], [0], [0], [1], [0, 0, 1, 1], [], []>} : vector<8x32xf32>, vector<32x256xf32>, vector<8x256xf32> -> vector<8x256xf32>
    %542 = vector.extract_strided_slice %398 {offsets = [12, 0], sizes = [4, 128], strides = [1, 1]} : vector<32x256xf32> to vector<4x128xf32>
    %543 = vector.extract_strided_slice %541 {offsets = [0, 0], sizes = [4, 128], strides = [1, 1]} : vector<8x256xf32> to vector<4x128xf32>
    %544 = arith.addf %542, %543 : vector<4x128xf32>
    %545 = vector.extract_strided_slice %398 {offsets = [16, 128], sizes = [4, 128], strides = [1, 1]} : vector<32x256xf32> to vector<4x128xf32>
    %546 = vector.extract_strided_slice %541 {offsets = [4, 128], sizes = [4, 128], strides = [1, 1]} : vector<8x256xf32> to vector<4x128xf32>
    %547 = arith.addf %545, %546 : vector<4x128xf32>
    %548 = tpu.concatenate %544, %547 in 0 : vector<4x128xf32>, vector<4x128xf32> -> vector<8x128xf32>
    %549 = vector.extract_strided_slice %548 {offsets = [0, 0], sizes = [8, 32], strides = [1, 1]} : vector<8x128xf32> to vector<8x32xf32>
    %550 = arith.negf %549 : vector<8x32xf32>
    %551 = math.exp %550 : vector<8x32xf32>
    %cst_77 = arith.constant 1.000000e+00 : f32
    %552 = vector.broadcast %cst_77 : f32 to vector<8x32xf32>
    %553 = arith.addf %552, %551 : vector<8x32xf32>
    %554 = arith.divf %552, %553 : vector<8x32xf32>
    %555 = vector.extract_strided_slice %548 {offsets = [0, 32], sizes = [8, 32], strides = [1, 1]} : vector<8x128xf32> to vector<8x32xf32>
    %556 = arith.negf %555 : vector<8x32xf32>
    %557 = math.exp %556 : vector<8x32xf32>
    %cst_78 = arith.constant 1.000000e+00 : f32
    %558 = vector.broadcast %cst_78 : f32 to vector<8x32xf32>
    %559 = arith.addf %558, %557 : vector<8x32xf32>
    %560 = arith.divf %558, %559 : vector<8x32xf32>
    %561 = vector.extract_strided_slice %548 {offsets = [0, 64], sizes = [8, 32], strides = [1, 1]} : vector<8x128xf32> to vector<8x32xf32>
    %562 = math.tanh %561 : vector<8x32xf32>
    %563 = vector.extract_strided_slice %548 {offsets = [0, 96], sizes = [8, 32], strides = [1, 1]} : vector<8x128xf32> to vector<8x32xf32>
    %564 = arith.negf %563 : vector<8x32xf32>
    %565 = math.exp %564 : vector<8x32xf32>
    %cst_79 = arith.constant 1.000000e+00 : f32
    %566 = vector.broadcast %cst_79 : f32 to vector<8x32xf32>
    %567 = arith.addf %566, %565 : vector<8x32xf32>
    %568 = arith.divf %566, %567 : vector<8x32xf32>
    %569 = arith.mulf %560, %535 : vector<8x32xf32>
    %570 = arith.mulf %554, %562 : vector<8x32xf32>
    %571 = arith.addf %569, %570 : vector<8x32xf32>
    %572 = math.tanh %571 : vector<8x32xf32>
    %573 = arith.mulf %568, %572 : vector<8x32xf32>
    %574 = vector.extract_strided_slice %4 {offsets = [0, 3], sizes = [8, 1], strides = [1, 1]} : vector<8x8xi32> to vector<8x1xi32>
    %575 = arith.cmpi slt, %574, %5 : vector<8x1xi32>
    %576 = vector.shape_cast %575 : vector<8x1xi1> to vector<8x1xi1>
    %577 = vector.broadcast %576 : vector<8x1xi1> to vector<8x32xi1>
    %578 = arith.select %577, %573, %532 : vector<8x32xi1>, vector<8x32xf32>
    %579 = vector.shape_cast %575 : vector<8x1xi1> to vector<8x1xi1>
    %580 = vector.broadcast %579 : vector<8x1xi1> to vector<8x32xi1>
    %581 = arith.select %580, %571, %535 : vector<8x32xi1>, vector<8x32xf32>
    %cst_80 = arith.constant 0.000000e+00 : f32
    %582 = vector.shape_cast %575 : vector<8x1xi1> to vector<8x1xi1>
    %583 = vector.broadcast %582 : vector<8x1xi1> to vector<8x32xi1>
    %584 = vector.broadcast %cst_80 : f32 to vector<8x32xf32>
    %585 = arith.select %583, %573, %584 : vector<8x32xi1>, vector<8x32xf32>
    %586 = arith.addf %540, %585 : vector<8x32xf32>
    %cst_81 = arith.constant dense<0.000000e+00> : vector<8x256xf32>
    %587 = tpu.matmul %578, %399, %cst_81 {dimension_numbers = #tpu.dot_dimension_numbers<[1], [0], [0], [1], [0, 0, 1, 1], [], []>} : vector<8x32xf32>, vector<32x256xf32>, vector<8x256xf32> -> vector<8x256xf32>
    %588 = vector.extract_strided_slice %398 {offsets = [16, 0], sizes = [4, 128], strides = [1, 1]} : vector<32x256xf32> to vector<4x128xf32>
    %589 = vector.extract_strided_slice %587 {offsets = [0, 0], sizes = [4, 128], strides = [1, 1]} : vector<8x256xf32> to vector<4x128xf32>
    %590 = arith.addf %588, %589 : vector<4x128xf32>
    %591 = vector.extract_strided_slice %398 {offsets = [12, 128], sizes = [4, 128], strides = [1, 1]} : vector<32x256xf32> to vector<4x128xf32>
    %592 = vector.extract_strided_slice %587 {offsets = [4, 128], sizes = [4, 128], strides = [1, 1]} : vector<8x256xf32> to vector<4x128xf32>
    %593 = arith.addf %591, %592 : vector<4x128xf32>
    %594 = tpu.concatenate %590, %593 in 0 : vector<4x128xf32>, vector<4x128xf32> -> vector<8x128xf32>
    %595 = vector.extract_strided_slice %594 {offsets = [0, 0], sizes = [8, 32], strides = [1, 1]} : vector<8x128xf32> to vector<8x32xf32>
    %596 = arith.negf %595 : vector<8x32xf32>
    %597 = math.exp %596 : vector<8x32xf32>
    %cst_82 = arith.constant 1.000000e+00 : f32
    %598 = vector.broadcast %cst_82 : f32 to vector<8x32xf32>
    %599 = arith.addf %598, %597 : vector<8x32xf32>
    %600 = arith.divf %598, %599 : vector<8x32xf32>
    %601 = vector.extract_strided_slice %594 {offsets = [0, 32], sizes = [8, 32], strides = [1, 1]} : vector<8x128xf32> to vector<8x32xf32>
    %602 = arith.negf %601 : vector<8x32xf32>
    %603 = math.exp %602 : vector<8x32xf32>
    %cst_83 = arith.constant 1.000000e+00 : f32
    %604 = vector.broadcast %cst_83 : f32 to vector<8x32xf32>
    %605 = arith.addf %604, %603 : vector<8x32xf32>
    %606 = arith.divf %604, %605 : vector<8x32xf32>
    %607 = vector.extract_strided_slice %594 {offsets = [0, 64], sizes = [8, 32], strides = [1, 1]} : vector<8x128xf32> to vector<8x32xf32>
    %608 = math.tanh %607 : vector<8x32xf32>
    %609 = vector.extract_strided_slice %594 {offsets = [0, 96], sizes = [8, 32], strides = [1, 1]} : vector<8x128xf32> to vector<8x32xf32>
    %610 = arith.negf %609 : vector<8x32xf32>
    %611 = math.exp %610 : vector<8x32xf32>
    %cst_84 = arith.constant 1.000000e+00 : f32
    %612 = vector.broadcast %cst_84 : f32 to vector<8x32xf32>
    %613 = arith.addf %612, %611 : vector<8x32xf32>
    %614 = arith.divf %612, %613 : vector<8x32xf32>
    %615 = arith.mulf %606, %581 : vector<8x32xf32>
    %616 = arith.mulf %600, %608 : vector<8x32xf32>
    %617 = arith.addf %615, %616 : vector<8x32xf32>
    %618 = math.tanh %617 : vector<8x32xf32>
    %619 = arith.mulf %614, %618 : vector<8x32xf32>
    %620 = vector.extract_strided_slice %4 {offsets = [0, 4], sizes = [8, 1], strides = [1, 1]} : vector<8x8xi32> to vector<8x1xi32>
    %621 = arith.cmpi slt, %620, %5 : vector<8x1xi32>
    %622 = vector.shape_cast %621 : vector<8x1xi1> to vector<8x1xi1>
    %623 = vector.broadcast %622 : vector<8x1xi1> to vector<8x32xi1>
    %624 = arith.select %623, %619, %578 : vector<8x32xi1>, vector<8x32xf32>
    %625 = vector.shape_cast %621 : vector<8x1xi1> to vector<8x1xi1>
    %626 = vector.broadcast %625 : vector<8x1xi1> to vector<8x32xi1>
    %627 = arith.select %626, %617, %581 : vector<8x32xi1>, vector<8x32xf32>
    %cst_85 = arith.constant 0.000000e+00 : f32
    %628 = vector.shape_cast %621 : vector<8x1xi1> to vector<8x1xi1>
    %629 = vector.broadcast %628 : vector<8x1xi1> to vector<8x32xi1>
    %630 = vector.broadcast %cst_85 : f32 to vector<8x32xf32>
    %631 = arith.select %629, %619, %630 : vector<8x32xi1>, vector<8x32xf32>
    %632 = arith.addf %586, %631 : vector<8x32xf32>
    %cst_86 = arith.constant dense<0.000000e+00> : vector<8x256xf32>
    %633 = tpu.matmul %624, %399, %cst_86 {dimension_numbers = #tpu.dot_dimension_numbers<[1], [0], [0], [1], [0, 0, 1, 1], [], []>} : vector<8x32xf32>, vector<32x256xf32>, vector<8x256xf32> -> vector<8x256xf32>
    %634 = vector.extract_strided_slice %398 {offsets = [20, 0], sizes = [4, 128], strides = [1, 1]} : vector<32x256xf32> to vector<4x128xf32>
    %635 = vector.extract_strided_slice %633 {offsets = [0, 0], sizes = [4, 128], strides = [1, 1]} : vector<8x256xf32> to vector<4x128xf32>
    %636 = arith.addf %634, %635 : vector<4x128xf32>
    %637 = vector.extract_strided_slice %398 {offsets = [8, 128], sizes = [4, 128], strides = [1, 1]} : vector<32x256xf32> to vector<4x128xf32>
    %638 = vector.extract_strided_slice %633 {offsets = [4, 128], sizes = [4, 128], strides = [1, 1]} : vector<8x256xf32> to vector<4x128xf32>
    %639 = arith.addf %637, %638 : vector<4x128xf32>
    %640 = tpu.concatenate %636, %639 in 0 : vector<4x128xf32>, vector<4x128xf32> -> vector<8x128xf32>
    %641 = vector.extract_strided_slice %640 {offsets = [0, 0], sizes = [8, 32], strides = [1, 1]} : vector<8x128xf32> to vector<8x32xf32>
    %642 = arith.negf %641 : vector<8x32xf32>
    %643 = math.exp %642 : vector<8x32xf32>
    %cst_87 = arith.constant 1.000000e+00 : f32
    %644 = vector.broadcast %cst_87 : f32 to vector<8x32xf32>
    %645 = arith.addf %644, %643 : vector<8x32xf32>
    %646 = arith.divf %644, %645 : vector<8x32xf32>
    %647 = vector.extract_strided_slice %640 {offsets = [0, 32], sizes = [8, 32], strides = [1, 1]} : vector<8x128xf32> to vector<8x32xf32>
    %648 = arith.negf %647 : vector<8x32xf32>
    %649 = math.exp %648 : vector<8x32xf32>
    %cst_88 = arith.constant 1.000000e+00 : f32
    %650 = vector.broadcast %cst_88 : f32 to vector<8x32xf32>
    %651 = arith.addf %650, %649 : vector<8x32xf32>
    %652 = arith.divf %650, %651 : vector<8x32xf32>
    %653 = vector.extract_strided_slice %640 {offsets = [0, 64], sizes = [8, 32], strides = [1, 1]} : vector<8x128xf32> to vector<8x32xf32>
    %654 = math.tanh %653 : vector<8x32xf32>
    %655 = vector.extract_strided_slice %640 {offsets = [0, 96], sizes = [8, 32], strides = [1, 1]} : vector<8x128xf32> to vector<8x32xf32>
    %656 = arith.negf %655 : vector<8x32xf32>
    %657 = math.exp %656 : vector<8x32xf32>
    %cst_89 = arith.constant 1.000000e+00 : f32
    %658 = vector.broadcast %cst_89 : f32 to vector<8x32xf32>
    %659 = arith.addf %658, %657 : vector<8x32xf32>
    %660 = arith.divf %658, %659 : vector<8x32xf32>
    %661 = arith.mulf %652, %627 : vector<8x32xf32>
    %662 = arith.mulf %646, %654 : vector<8x32xf32>
    %663 = arith.addf %661, %662 : vector<8x32xf32>
    %664 = math.tanh %663 : vector<8x32xf32>
    %665 = arith.mulf %660, %664 : vector<8x32xf32>
    %666 = vector.extract_strided_slice %4 {offsets = [0, 5], sizes = [8, 1], strides = [1, 1]} : vector<8x8xi32> to vector<8x1xi32>
    %667 = arith.cmpi slt, %666, %5 : vector<8x1xi32>
    %668 = vector.shape_cast %667 : vector<8x1xi1> to vector<8x1xi1>
    %669 = vector.broadcast %668 : vector<8x1xi1> to vector<8x32xi1>
    %670 = arith.select %669, %665, %624 : vector<8x32xi1>, vector<8x32xf32>
    %671 = vector.shape_cast %667 : vector<8x1xi1> to vector<8x1xi1>
    %672 = vector.broadcast %671 : vector<8x1xi1> to vector<8x32xi1>
    %673 = arith.select %672, %663, %627 : vector<8x32xi1>, vector<8x32xf32>
    %cst_90 = arith.constant 0.000000e+00 : f32
    %674 = vector.shape_cast %667 : vector<8x1xi1> to vector<8x1xi1>
    %675 = vector.broadcast %674 : vector<8x1xi1> to vector<8x32xi1>
    %676 = vector.broadcast %cst_90 : f32 to vector<8x32xf32>
    %677 = arith.select %675, %665, %676 : vector<8x32xi1>, vector<8x32xf32>
    %678 = arith.addf %632, %677 : vector<8x32xf32>
    %cst_91 = arith.constant dense<0.000000e+00> : vector<8x256xf32>
    %679 = tpu.matmul %670, %399, %cst_91 {dimension_numbers = #tpu.dot_dimension_numbers<[1], [0], [0], [1], [0, 0, 1, 1], [], []>} : vector<8x32xf32>, vector<32x256xf32>, vector<8x256xf32> -> vector<8x256xf32>
    %680 = vector.extract_strided_slice %398 {offsets = [24, 0], sizes = [4, 128], strides = [1, 1]} : vector<32x256xf32> to vector<4x128xf32>
    %681 = vector.extract_strided_slice %679 {offsets = [0, 0], sizes = [4, 128], strides = [1, 1]} : vector<8x256xf32> to vector<4x128xf32>
    %682 = arith.addf %680, %681 : vector<4x128xf32>
    %683 = vector.extract_strided_slice %398 {offsets = [4, 128], sizes = [4, 128], strides = [1, 1]} : vector<32x256xf32> to vector<4x128xf32>
    %684 = vector.extract_strided_slice %679 {offsets = [4, 128], sizes = [4, 128], strides = [1, 1]} : vector<8x256xf32> to vector<4x128xf32>
    %685 = arith.addf %683, %684 : vector<4x128xf32>
    %686 = tpu.concatenate %682, %685 in 0 : vector<4x128xf32>, vector<4x128xf32> -> vector<8x128xf32>
    %687 = vector.extract_strided_slice %686 {offsets = [0, 0], sizes = [8, 32], strides = [1, 1]} : vector<8x128xf32> to vector<8x32xf32>
    %688 = arith.negf %687 : vector<8x32xf32>
    %689 = math.exp %688 : vector<8x32xf32>
    %cst_92 = arith.constant 1.000000e+00 : f32
    %690 = vector.broadcast %cst_92 : f32 to vector<8x32xf32>
    %691 = arith.addf %690, %689 : vector<8x32xf32>
    %692 = arith.divf %690, %691 : vector<8x32xf32>
    %693 = vector.extract_strided_slice %686 {offsets = [0, 32], sizes = [8, 32], strides = [1, 1]} : vector<8x128xf32> to vector<8x32xf32>
    %694 = arith.negf %693 : vector<8x32xf32>
    %695 = math.exp %694 : vector<8x32xf32>
    %cst_93 = arith.constant 1.000000e+00 : f32
    %696 = vector.broadcast %cst_93 : f32 to vector<8x32xf32>
    %697 = arith.addf %696, %695 : vector<8x32xf32>
    %698 = arith.divf %696, %697 : vector<8x32xf32>
    %699 = vector.extract_strided_slice %686 {offsets = [0, 64], sizes = [8, 32], strides = [1, 1]} : vector<8x128xf32> to vector<8x32xf32>
    %700 = math.tanh %699 : vector<8x32xf32>
    %701 = vector.extract_strided_slice %686 {offsets = [0, 96], sizes = [8, 32], strides = [1, 1]} : vector<8x128xf32> to vector<8x32xf32>
    %702 = arith.negf %701 : vector<8x32xf32>
    %703 = math.exp %702 : vector<8x32xf32>
    %cst_94 = arith.constant 1.000000e+00 : f32
    %704 = vector.broadcast %cst_94 : f32 to vector<8x32xf32>
    %705 = arith.addf %704, %703 : vector<8x32xf32>
    %706 = arith.divf %704, %705 : vector<8x32xf32>
    %707 = arith.mulf %698, %673 : vector<8x32xf32>
    %708 = arith.mulf %692, %700 : vector<8x32xf32>
    %709 = arith.addf %707, %708 : vector<8x32xf32>
    %710 = math.tanh %709 : vector<8x32xf32>
    %711 = arith.mulf %706, %710 : vector<8x32xf32>
    %712 = vector.extract_strided_slice %4 {offsets = [0, 6], sizes = [8, 1], strides = [1, 1]} : vector<8x8xi32> to vector<8x1xi32>
    %713 = arith.cmpi slt, %712, %5 : vector<8x1xi32>
    %714 = vector.shape_cast %713 : vector<8x1xi1> to vector<8x1xi1>
    %715 = vector.broadcast %714 : vector<8x1xi1> to vector<8x32xi1>
    %716 = arith.select %715, %711, %670 : vector<8x32xi1>, vector<8x32xf32>
    %717 = vector.shape_cast %713 : vector<8x1xi1> to vector<8x1xi1>
    %718 = vector.broadcast %717 : vector<8x1xi1> to vector<8x32xi1>
    %719 = arith.select %718, %709, %673 : vector<8x32xi1>, vector<8x32xf32>
    %cst_95 = arith.constant 0.000000e+00 : f32
    %720 = vector.shape_cast %713 : vector<8x1xi1> to vector<8x1xi1>
    %721 = vector.broadcast %720 : vector<8x1xi1> to vector<8x32xi1>
    %722 = vector.broadcast %cst_95 : f32 to vector<8x32xf32>
    %723 = arith.select %721, %711, %722 : vector<8x32xi1>, vector<8x32xf32>
    %724 = arith.addf %678, %723 : vector<8x32xf32>
    %cst_96 = arith.constant dense<0.000000e+00> : vector<8x256xf32>
    %725 = tpu.matmul %716, %399, %cst_96 {dimension_numbers = #tpu.dot_dimension_numbers<[1], [0], [0], [1], [0, 0, 1, 1], [], []>} : vector<8x32xf32>, vector<32x256xf32>, vector<8x256xf32> -> vector<8x256xf32>
    %726 = vector.extract_strided_slice %398 {offsets = [28, 0], sizes = [4, 128], strides = [1, 1]} : vector<32x256xf32> to vector<4x128xf32>
    %727 = vector.extract_strided_slice %725 {offsets = [0, 0], sizes = [4, 128], strides = [1, 1]} : vector<8x256xf32> to vector<4x128xf32>
    %728 = arith.addf %726, %727 : vector<4x128xf32>
    %729 = vector.extract_strided_slice %398 {offsets = [0, 128], sizes = [4, 128], strides = [1, 1]} : vector<32x256xf32> to vector<4x128xf32>
    %730 = vector.extract_strided_slice %725 {offsets = [4, 128], sizes = [4, 128], strides = [1, 1]} : vector<8x256xf32> to vector<4x128xf32>
    %731 = arith.addf %729, %730 : vector<4x128xf32>
    %732 = tpu.concatenate %728, %731 in 0 : vector<4x128xf32>, vector<4x128xf32> -> vector<8x128xf32>
    %733 = vector.extract_strided_slice %732 {offsets = [0, 0], sizes = [8, 32], strides = [1, 1]} : vector<8x128xf32> to vector<8x32xf32>
    %734 = arith.negf %733 : vector<8x32xf32>
    %735 = math.exp %734 : vector<8x32xf32>
    %cst_97 = arith.constant 1.000000e+00 : f32
    %736 = vector.broadcast %cst_97 : f32 to vector<8x32xf32>
    %737 = arith.addf %736, %735 : vector<8x32xf32>
    %738 = arith.divf %736, %737 : vector<8x32xf32>
    %739 = vector.extract_strided_slice %732 {offsets = [0, 32], sizes = [8, 32], strides = [1, 1]} : vector<8x128xf32> to vector<8x32xf32>
    %740 = arith.negf %739 : vector<8x32xf32>
    %741 = math.exp %740 : vector<8x32xf32>
    %cst_98 = arith.constant 1.000000e+00 : f32
    %742 = vector.broadcast %cst_98 : f32 to vector<8x32xf32>
    %743 = arith.addf %742, %741 : vector<8x32xf32>
    %744 = arith.divf %742, %743 : vector<8x32xf32>
    %745 = vector.extract_strided_slice %732 {offsets = [0, 64], sizes = [8, 32], strides = [1, 1]} : vector<8x128xf32> to vector<8x32xf32>
    %746 = math.tanh %745 : vector<8x32xf32>
    %747 = vector.extract_strided_slice %732 {offsets = [0, 96], sizes = [8, 32], strides = [1, 1]} : vector<8x128xf32> to vector<8x32xf32>
    %748 = arith.negf %747 : vector<8x32xf32>
    %749 = math.exp %748 : vector<8x32xf32>
    %cst_99 = arith.constant 1.000000e+00 : f32
    %750 = vector.broadcast %cst_99 : f32 to vector<8x32xf32>
    %751 = arith.addf %750, %749 : vector<8x32xf32>
    %752 = arith.divf %750, %751 : vector<8x32xf32>
    %753 = arith.mulf %744, %719 : vector<8x32xf32>
    %754 = arith.mulf %738, %746 : vector<8x32xf32>
    %755 = arith.addf %753, %754 : vector<8x32xf32>
    %756 = math.tanh %755 : vector<8x32xf32>
    %757 = arith.mulf %752, %756 : vector<8x32xf32>
    %758 = vector.extract_strided_slice %4 {offsets = [0, 7], sizes = [8, 1], strides = [1, 1]} : vector<8x8xi32> to vector<8x1xi32>
    %759 = arith.cmpi slt, %758, %5 : vector<8x1xi32>
    %cst_100 = arith.constant 0.000000e+00 : f32
    %760 = vector.shape_cast %759 : vector<8x1xi1> to vector<8x1xi1>
    %761 = vector.broadcast %760 : vector<8x1xi1> to vector<8x32xi1>
    %762 = vector.broadcast %cst_100 : f32 to vector<8x32xf32>
    %763 = arith.select %761, %757, %762 : vector<8x32xi1>, vector<8x32xf32>
    %764 = arith.addf %724, %763 : vector<8x32xf32>
    %765 = vector.extract_strided_slice %764 {offsets = [0, 0], sizes = [4, 32], strides = [1, 1]} : vector<8x32xf32> to vector<4x32xf32>
    %766 = vector.extract_strided_slice %764 {offsets = [4, 0], sizes = [4, 32], strides = [1, 1]} : vector<8x32xf32> to vector<4x32xf32>
    %767 = tpu.concatenate %765, %766 in 1 : vector<4x32xf32>, vector<4x32xf32> -> vector<4x64xf32>
    %c0_101 = arith.constant 0 : index
    %c0_102 = arith.constant 0 : index
    %768 = vector.load %arg8[%c0_101, %c0_102] : memref<64x7xf32, #tpu.memory_space<vmem>>, vector<64x7xf32>
    %cst_103 = arith.constant dense<0.000000e+00> : vector<4x7xf32>
    %769 = tpu.matmul %767, %768, %cst_103 {dimension_numbers = #tpu.dot_dimension_numbers<[1], [0], [0], [1], [0, 0, 1, 1], [], []>} : vector<4x64xf32>, vector<64x7xf32>, vector<4x7xf32> -> vector<4x7xf32>
    %c0_104 = arith.constant 0 : index
    %c0_105 = arith.constant 0 : index
    %770 = vector.load %arg9[%c0_104, %c0_105] : memref<1x7xf32, #tpu.memory_space<vmem>>, vector<1x7xf32>
    %771 = vector.broadcast %770 : vector<1x7xf32> to vector<4x7xf32>
    %772 = arith.addf %769, %771 : vector<4x7xf32>
    %c0_106 = arith.constant 0 : index
    %c0_107 = arith.constant 0 : index
    %773 = vector.load %arg10[%c0_106, %c0_107] : memref<4x7xf32, #tpu.memory_space<vmem>>, vector<4x7xf32>
    tpu.vector_store %arg10[%c0_106, %c0_107], %772 {strides = array<i32>} : memref<4x7xf32, #tpu.memory_space<vmem>>, vector<4x7xf32>,
    return
  }
}

</mosaic_0001>

<bundles_post_ra>
// kernel: tpu_custom_call.1
= control target key start
LH: loop header
LB: loop body
LE: loop exit
PB: predicated region body
PF: predicated region fallthrough
CT: control target
= control target key end

     0   :  { %15 = vsyncpa [#allocation3], 0  ;;  %s3553_s0 = inlined_call_operand.vmem [shape: f32[32,16], index: 0, kind: input, shape index: {}]   ;;  %s3554_s1 = inlined_call_operand.vmem [shape: s32[4,1], index: 1, kind: input, shape index: {}]   ;;  %s3555_s2 = inlined_call_operand.hbm [shape: f32[16,256], index: 2, kind: input, shape index: {}]   ;;  %s3556_s3 = inlined_call_operand.hbm [shape: f32[32,256], index: 3, kind: input, shape index: {}]   ;;  %s3557_s4 = inlined_call_operand.hbm [shape: f32[1,256], index: 4, kind: input, shape index: {}]   ;;  %s3558_s5 = inlined_call_operand.vmem [shape: f32[64,256], index: 5, kind: input, shape index: {}]   ;;  %s3559_s6 = inlined_call_operand.hbm [shape: f32[32,256], index: 6, kind: input, shape index: {}]   ;;  %s3560_s7 = inlined_call_operand.hbm [shape: f32[1,256], index: 7, kind: input, shape index: {}]   ;;  %s3561_s8 = inlined_call_operand.vmem [shape: f32[64,7], index: 8, kind: input, shape index: {}]   ;;  %s3562_s9 = inlined_call_operand.vmem [shape: f32[1,7], index: 9, kind: input, shape index: {}]   ;;  %s3563_s10 = inlined_call_operand.hbm [shape: f32[4,7], index: 10, kind: output, shape index: {}]  }
   0x1   :  { %16 = vsyncpa [#allocation6], 0 }
   0x2   :  { %17 = vsyncpa [#allocation9], 0 }
   0x3   :  { %18 = vsyncpa [#allocation4], 0  ;;  %s2787_s13 = smov [#allocation5]   ;;  %s2788_s15 = smov [#allocation8]  }
   0x4   :  { %s40_s14 = sshll.u32 %s2787_s13, 4  ;;  %s64_s16 = sshll.u32 %s2788_s15, 4  ;;  %s41_s14 = int_to_ptr.vmem [resolvable:$true] %s40_s14  ;;  %s65_s16 = int_to_ptr.vmem [resolvable:$true] %s64_s16 }
   0x5   :  { %s2667_s17 = scalar_lea.vmem %s41_s14, 1024  ;;  %p2672_p1 = scmp.lt.s32.totalorder %s41_s14, %s41_s14 }
   0x6   :  { %p2668_p0 = scmp.ne.s32.totalorder %s41_s14, %s2667_s17  ;;  %p2673_p2 = scmp.lt.s32.totalorder %s2667_s17, %s2667_s17 }
   0x8   :  { %p2674_p3 = por %p2673_p2, %p2672_p1 }
   0xa   :  { %p2675_p4 = pnand %p2674_p3, %p2668_p0 }
   0xc   :  { %2678 = shalt.err (!%p2675_p4)
}
   0xd   :  { %s2789_s18 = smov 256   ;;  %s2790_s19 = smov 16  }
   0xe   :  { %46 = dma.hbm_to_vmem [thread:$0]  %s3556_s3, 1024, %s41_s14, [#allocation6], %s2789_s18, %s2789_s18, %s2790_s19  }
   0xf   :  { %s2687_s22 = scalar_lea.vmem %s65_s16, 1024  ;;  %p2692_p6 = scmp.lt.s32.totalorder %s65_s16, %s65_s16 }
  0x10   :  { %p2688_p5 = scmp.ne.s32.totalorder %s65_s16, %s2687_s22  ;;  %p2693_p7 = scmp.lt.s32.totalorder %s2687_s22, %s2687_s22 }
  0x12   :  { %p2694_p8 = por %p2693_p7, %p2692_p6 }
  0x14   :  { %p2695_p9 = pnand %p2694_p8, %p2688_p5 }
  0x16   :  { %2698 = shalt.err (!%p2695_p9)
}
  0x17   :  { %70 = dma.hbm_to_vmem [thread:$0]  %s3559_s6, 1024, %s65_s16, [#allocation9], %s2789_s18, %s2789_s18, %s2790_s19  }
  0x18   :  { %s2791_s25 = smov [#allocation2]   ;;  %s2792_s27 = smov [#allocation7]  }
  0x19   :  { %s28_s26 = sshll.u32 %s2791_s25, 4  ;;  %s53_s28 = sshll.u32 %s2792_s27, 4  ;;  %s29_s26 = int_to_ptr.vmem [resolvable:$true] %s28_s26  ;;  %s54_s28 = int_to_ptr.vmem [resolvable:$true] %s53_s28 }
  0x1a   :  { %s2707_s29 = scalar_lea.vmem %s29_s26, 512  ;;  %p2712_p11 = scmp.lt.s32.totalorder %s29_s26, %s29_s26 }
  0x1b   :  { %p2708_p10 = scmp.ne.s32.totalorder %s29_s26, %s2707_s29  ;;  %p2713_p12 = scmp.lt.s32.totalorder %s2707_s29, %s2707_s29 }
  0x1d   :  { %p2714_p13 = por %p2713_p12, %p2712_p11 }
  0x1f   :  { %p2715_p0 = pnand %p2714_p13, %p2708_p10 }
  0x21   :  { %2718 = shalt.err (!%p2715_p0)
}
  0x22   :  { %34 = dma.hbm_to_vmem [thread:$0]  %s3555_s2, 512, %s29_s26, [#allocation3], %s2789_s18, %s2789_s18, %s2790_s19  }
  0x23   :  { %s2727_s11 = scalar_lea.vmem %s54_s28, 32  ;;  %p2732_p2 = scmp.lt.s32.totalorder %s54_s28, %s54_s28 }
  0x24   :  { %p2728_p1 = scmp.ne.s32.totalorder %s54_s28, %s2727_s11  ;;  %p2733_p3 = scmp.lt.s32.totalorder %s2727_s11, %s2727_s11 }
  0x26   :  { %p2734_p4 = por %p2733_p3, %p2732_p2 }
  0x28   :  { %p2735_p5 = pnand %p2734_p4, %p2728_p1 }
  0x2a   :  { %2738 = shalt.err (!%p2735_p5)
}
  0x2b   :  { %56 = dma.hbm_to_vmem [thread:$0]  %s3557_s4, 32, %s54_s28, [#allocation6]  }
  0x2c   :  { %s2793_s13 = smov [#allocation10]  }
  0x2d   :  { %s77_s14 = sshll.u32 %s2793_s13, 4  ;;  %s78_s14 = int_to_ptr.vmem [resolvable:$true] %s77_s14 }
  0x2e   :  { %s2747_s15 = scalar_lea.vmem %s78_s14, 32  ;;  %p2752_p7 = scmp.lt.s32.totalorder %s78_s14, %s78_s14 }
  0x2f   :  { %p2748_p6 = scmp.ne.s32.totalorder %s78_s14, %s2747_s15  ;;  %p2753_p8 = scmp.lt.s32.totalorder %s2747_s15, %s2747_s15 }
  0x31   :  { %p2754_p9 = por %p2753_p8, %p2752_p7 }
  0x33   :  { %p2755_p10 = pnand %p2754_p9, %p2748_p6 }
  0x35   :  { %2758 = shalt.err (!%p2755_p10)
}
  0x36   :  { %80 = dma.hbm_to_vmem [thread:$0]  %s3560_s7, 32, %s78_s14, [#allocation9]  }
  0x37   :  { %2779 = dma.done.wait [#allocation3], 512  }
  0x38   :  { %2780 = vsyncadd [#allocation3], 4294966784 }
  0x39   :  { %2781 = dma.done.wait [#allocation6], 1056  }
  0x3a   :  { %2782 = vsyncadd [#allocation6], 4294966240 }
  0x3b   :  { %2783 = dma.done.wait [#allocation9], 1056  }
  0x3c   :  { %2784 = vsyncadd [#allocation9], 4294966240  ;;  %v2794_v0 = vmov 0.0   ;;  %v115_v1 = vld [vmem:[#allocation2 + $0x18] sm:$0xff]  ;;  %v114_v2 = vld [vmem:[#allocation2 + $0x10] sm:$0xff]  ;;  %vm128_vm0 = vcmask 130048   ;;  %v101_v17 = vlaneseq }
  0x3d   :  { %205 = vmatprep.mubr.f32.mxu0 %v2794_v0  ;;  %417 = vmatprep.mubr.f32.mxu1 %v2794_v0  ;;  %v113_v3 = vld [vmem:[#allocation2 + $0x8] sm:$0xff]  ;;  %v112_v4 = vld [vmem:[#allocation2] sm:$0xff]  ;;  %v2886_v5 = vld [vmem:[#allocation5 + $0x38] sm:$0xff]  ;;  %vm104_vm1 = vcmask 1043456   ;;  %v2795_v21 = vmov 0   ;;  %s2797_s24 = smov 32  }
  0x3e   :  { %169 = vmatprep.subr.mxu0 %v115_v1  ;;  %v108_v6 = vld [vmem:[%s3553_s0] sm:$0xff]  ;;  %v2891_v7 = vld [vmem:[#allocation5 + $0x30] sm:$0xff]  ;;  %377 = vmatprep.subr.mxu1 %v2886_v5  ;;  %v2894_v8 = vld [vmem:[#allocation5 + $0x28] sm:$0xff]  ;;  %v102_v18 = vand.u32 127, %v101_v17  ;;  %v2963_v26 = vshrl.u32 %v101_v17, 7  ;;  %vm238_vm4 = vcmask 261120  }
  0x3f   :  { %170 = vmatpush1.msra.mxu0 %v114_v2  ;;  %378 = vmatpush1.msra.mxu1 %v2891_v7  ;;  %v2900_v9 = vld [vmem:[#allocation5 + $0x20] sm:$0xff]  ;;  %v109_v10 = vld [vmem:[%s3553_s0 + $0x8] sm:$0xff]  ;;  %v2907_v11 = vld [vmem:[#allocation5 + $0x18] sm:$0xff]  ;;  %s2799_s25 = smov 1   ;;  %s2801_s26 = smov 2  }
  0x40   :  { %171 = vmatprep.subr.mxu0 %v113_v3  ;;  %379 = vmatprep.subr.mxu1 %v2894_v8  ;;  %v2910_v12 = vld [vmem:[#allocation5 + $0x10] sm:$0xff]  ;;  %v2914_v13 = vld [vmem:[#allocation5 + $0x8] sm:$0xff]  ;;  %v2919_v14 = vld [vmem:[#allocation5] sm:$0xff]  ;;  %v103_v19 = vsub.s32 7, %v102_v18  ;;  %v124_v27 = vsub.s32 1, %v2963_v26  ;;  %v120_v29 = vsub.s32 0, %v2963_v26 }
  0x41   :  { %172 = vmatpush1.msra.mxu0 %v112_v4  ;;  %380 = vmatpush1.msra.mxu1 %v2900_v9  ;;  %v110_v15 = vld [vmem:[%s3553_s0 + $0x10] sm:$0xff]  ;;  %v111_v16 = vld [vmem:[%s3553_s0 + $0x18] sm:$0xff]  ;;  %v100_v20 = vld [vmem:[%s3554_s1] sm:$0xf]  ;;  %s2796_s1 = smov 64   ;;  %s2803_s27 = smov 3  }
  0x42   :  { %2427 = vmatmul.mubr.msk.f32.vlgmr.msra.gmra.mxu0 %vm128_vm0, %v108_v6  ;;  %266 = vmatprep.subr.mxu0 %v2886_v5  ;;  %v2955_v22 = vsel %vm104_vm1, %v102_v18, %v103_v19  ;;  %v106_v23 = vrot.slane %v100_v20, 4  ;;  %v116_v28 = vld [vmem:[#allocation7] sm:$0x3]  ;;  %s2805_s28 = smov 4   ;;  %s2807_s29 = smov 5  }
  0x43   :  { %267 = vmatpush1.msra.mxu0 %v2891_v7  ;;  %211 = vmatprep.mubr.f32.mxu0 %v2794_v0  ;;  %v125_v30 = vrot.slane %v116_v28, %v124_v27  ;;  %v121_v33 = vrot.slane %v116_v28, %v120_v29  ;;  %v2798_v28 = vmov 1   ;;  %s2809_s3 = smov 6   ;;  %s2811_s30 = smov 7  }
  0x44   :  { %268 = vmatprep.subr.mxu0 %v2894_v8  ;;  %381 = vmatprep.subr.mxu1 %v2907_v11  ;;  %v2958_v24 = vsel %vm104_vm1, %v100_v20, %v106_v23 }
  0x45   :  { %269 = vmatpush1.msra.mxu0 %v2900_v9  ;;  %382 = vmatpush1.msra.mxu1 %v2910_v12  ;;  %vm340_vm2 = vcmp.lt.s32.totalorder %v2955_v22, %v2958_v24 }
  0x46   :  { %2428 = vmatmul.mubr.msk.f32.gmra.mxu0 %vm128_vm0, %v109_v10  ;;  %270 = vmatprep.subr.mxu0 %v2907_v11  ;;  %v341_v25 = vsel %vm340_vm2, 1, %v2795_v21 }
  0x47   :  { %217 = vmatprep.mubr.f32.mxu0 %v2794_v0  ;;  %271 = vmatpush1.msra.mxu0 %v2910_v12 }
  0x48   :  { %272 = vmatprep.subr.mxu0 %v2914_v13  ;;  %383 = vmatprep.subr.mxu1 %v2914_v13 }
  0x49   :  { %273 = vmatpush1.msra.mxu0 %v2919_v14  ;;  %384 = vmatpush1.msra.mxu1 %v2919_v14 }
  0x4a   :  { %2429 = vmatmul.mubr.msk.f32.gmra.mxu0 %vm128_vm0, %v110_v15  ;;  %503 = vmatprep.subr.mxu0 %v2886_v5 }
  0x4b   :  { %223 = vmatprep.mubr.f32.mxu0 %v2794_v0  ;;  %617 = vmatprep.subr.mxu1 %v2886_v5 }
  0x4c   :  { %2522 = vset.pattern.permute.xlu1 %v2795_v21  ;;  %2523 = vset.pattern.permute.xlu0 %v2798_v28 }
  0x4d   :  { %343 = vperm.xlu1 %2522, %v341_v25  }
  0x4e   :  { %2430 = vmatmul.mubr.msk.f32.gmra.mxu0 %vm128_vm0, %v111_v16 }
  0x4f   :  { %306 = vmatprep.mubr.f32.mxu0 %v2794_v0 }
  0x52   :  { %307 = vmatmul.mubr.f32.vlgmr.msra.gmra.mxu0 %v2794_v0 }
  0x53   :  { %504 = vmatpush1.msra.mxu0 %v2891_v7  ;;  %543 = vmatprep.mubr.f32.mxu0 %v2794_v0 }
  0x54   :  { %505 = vmatprep.subr.mxu0 %v2894_v8 }
  0x55   :  { %506 = vmatpush1.msra.mxu0 %v2900_v9 }
  0x56   :  { %507 = vmatprep.subr.mxu0 %v2907_v11 }
  0x57   :  { %508 = vmatpush1.msra.mxu0 %v2910_v12 }
  0x58   :  { %509 = vmatprep.subr.mxu0 %v2914_v13 }
  0x59   :  { %510 = vmatpush1.msra.mxu0 %v2919_v14 }
  0x5a   :  { %743 = vmatprep.subr.mxu0 %v2886_v5 }
  0xc8   :  { %v2987_v1 = vpop.permute.xlu1 %343 }
  0xc9   :  { %vm345_vm3 = vcmp.eq.s32.totalorder %v2987_v1, 1 }
 0x102   :  { %v207_v31 = vpop.f32.mrf.mxu0 }
 0x103   :  { %v208_v47 = vadd.f32 %v207_v31, %v121_v33 }
 0x104   :  { %v209_v32 = vpop.f32.mrf.mxu0 }
 0x105   :  { %v2971_v34 = vadd.f32 %v209_v32, %v125_v30 }
 0x106   :  { %v213_v35 = vpop.f32.mrf.mxu0 }
 0x107   :  { %v2973_v36 = vadd.f32 %v213_v35, %v121_v33 }
 0x108   :  { %v215_v37 = vpop.f32.mrf.mxu0 }
 0x109   :  { %v2975_v38 = vadd.f32 %v215_v37, %v125_v30 }
 0x10a   :  { %v219_v39 = vpop.f32.mrf.mxu0 }
 0x10b   :  { %v2977_v40 = vadd.f32 %v219_v39, %v121_v33 }
 0x10c   :  { %v221_v41 = vpop.f32.mrf.mxu0 }
 0x10d   :  { %v2979_v42 = vadd.f32 %v221_v41, %v125_v30 }
 0x10e   :  { %v225_v43 = vpop.f32.mrf.mxu0 }
 0x10f   :  { %v2981_v44 = vadd.f32 %v225_v43, %v121_v33 }
 0x110   :  { %v227_v45 = vpop.f32.mrf.mxu0 }
 0x111   :  { %v228_v48 = vadd.f32 %v227_v45, %v125_v30 }
 0x112   :  { %v308_v46 = vpop.f32.mrf.mxu0 }
 0x113   :  { %v313_v50 = vadd.f32 %v308_v46, %v208_v47 }
 0x114   :  { %v310_v49 = vpop.f32.mrf.mxu0 }
 0x115   :  { %v314_v51 = vadd.f32 %v310_v49, %v228_v48 }
 0x117   :  { %v315_v52 = vsel %vm104_vm1, %v313_v50, %v314_v51 }
 0x118   :  { %2531 = vtanh.f32 %v315_v52  ;;  %v2431_v54 = vmul.f32 -1.442695, %v315_v52 }
 0x11a   :  { %2533 = vpow2.f32 %v2431_v54 }
 0x125   :  { %v2532_v53 = vpop.eup %2531 }
 0x126   :  { %325 = vrot.lane.b32.xlu0 %v2532_v53, %s2796_s1 }
 0x127   :  { %v2534_v55 = vpop.eup %2533 }
 0x128   :  { %v319_v56 = vadd.f32 1.0, %v2534_v55 }
 0x12a   :  { %2535 = vrcp.f32 %v319_v56 }
 0x137   :  { %v2536_v57 = vpop.eup %2535 }
 0x138   :  { %v323_v60 = vmul.f32 0.0, %v2536_v57 }
 0x198   :  { %v326_v58 = vpop.permute.xlu0 %325 }
 0x199   :  { %v328_v59 = vmul.f32 %v2536_v57, %v326_v58 }
 0x19b   :  { %330 = vrot.lane.b32.xlu0 %v328_v59, %s2797_s24 }
 0x20d   :  { %v331_v61 = vpop.permute.xlu0 %330 }
 0x20e   :  { %v333_v62 = vadd.f32 %v331_v61, %v323_v60  ;;  %v2800_v60 = vmov 2  }
 0x20f   :  { %2524 = vset.pattern.permute.xlu1 %v2800_v60 }
 0x210   :  { %2537 = vtanh.f32 %v333_v62  ;;  %v347_v45 = vsel %vm345_vm3, %v333_v62, 0.0 }
 0x21d   :  { %v2538_v63 = vpop.eup %2537 }
 0x21e   :  { %336 = vrot.lane.b32.xlu1 %v2538_v63, %s2796_s1 }
 0x290   :  { %v337_v2 = vpop.permute.xlu1 %336 }
 0x291   :  { %v339_v3 = vmul.f32 %v2536_v57, %v337_v2 }
 0x293   :  { %v2992_v4 = vsel %vm345_vm3, %v339_v3, 0.0 }
 0x294   :  { %349 = vrot.lane.b32.xlu0 %v2992_v4, %s2797_s24 }
 0x306   :  { %v2996_v6 = vpop.permute.xlu0 %349 }
 0x307   :  { %2432 = vmatmul.mubr.msk.f32.vlgmr.msra.gmra.mxu1 %vm238_vm4, %v2996_v6 }
 0x308   :  { %618 = vmatpush1.msra.mxu1 %v2891_v7  ;;  %657 = vmatprep.mubr.f32.mxu1 %v2794_v0 }
 0x309   :  { %619 = vmatprep.subr.mxu1 %v2894_v8 }
 0x30a   :  { %620 = vmatpush1.msra.mxu1 %v2900_v9 }
 0x30b   :  { %621 = vmatprep.subr.mxu1 %v2907_v11 }
 0x30c   :  { %622 = vmatpush1.msra.mxu1 %v2910_v12 }
 0x30d   :  { %623 = vmatprep.subr.mxu1 %v2914_v13 }
 0x30e   :  { %624 = vmatpush1.msra.mxu1 %v2919_v14 }
 0x30f   :  { %857 = vmatprep.subr.mxu1 %v2886_v5 }
 0x3c7   :  { %v419_v10 = vpop.f32.mrf.mxu1 }
 0x3c8   :  { %v425_v15 = vrot.slane %v419_v10, 4 }
 0x3c9   :  { %v421_v16 = vpop.f32.mrf.mxu1 }
 0x3ca   :  { %v427_v17 = vadd.f32 %v425_v15, %v208_v47  ;;  %v429_v18 = vrot.slane %v421_v16, 4 }
 0x3cc   :  { %v431_v19 = vadd.f32 %v429_v18, %v228_v48  ;;  %v433_v20 = vrot.slane %v427_v17, 4 }
 0x3ce   :  { %v436_v23 = vrot.slane %v431_v19, 4 }
 0x3d0   :  { %v438_v25 = vsel %vm104_vm1, %v433_v20, %v436_v23 }
 0x3d1   :  { %2539 = vtanh.f32 %v438_v25  ;;  %v2433_v31 = vmul.f32 -1.442695, %v438_v25 }
 0x3d3   :  { %2541 = vpow2.f32 %v2433_v31 }
 0x3de   :  { %v2540_v30 = vpop.eup %2539 }
 0x3df   :  { %448 = vrot.lane.b32.xlu1 %v2540_v30, %s2796_s1 }
 0x3e0   :  { %v2542_v32 = vpop.eup %2541 }
 0x3e1   :  { %v442_v33 = vadd.f32 1.0, %v2542_v32 }
 0x3e3   :  { %463 = vrot.lane.b32.xlu1 %v2958_v24, %s2799_s25  ;;  %2543 = vrcp.f32 %v442_v33 }
 0x3f0   :  { %v2544_v35 = vpop.eup %2543 }
 0x3f1   :  { %v446_v46 = vmul.f32 %v2544_v35, %v347_v45 }
 0x451   :  { %v449_v37 = vpop.permute.xlu1 %448 }
 0x452   :  { %v451_v39 = vmul.f32 %v2544_v35, %v449_v37 }
 0x454   :  { %453 = vrot.lane.b32.xlu0 %v451_v39, %s2797_s24 }
 0x455   :  { %v464_v41 = vpop.permute.xlu1 %463 }
 0x456   :  { %vm465_vm5 = vcmp.lt.s32.totalorder %v2955_v22, %v464_v41 }
 0x457   :  { %v466_v43 = vsel %vm465_vm5, 1, %v2795_v21 }
 0x458   :  { %468 = vperm.xlu0 %2523, %v466_v43  }
 0x4c6   :  { %v454_v47 = vpop.permute.xlu0 %453 }
 0x4c7   :  { %v456_v48 = vadd.f32 %v454_v47, %v446_v46 }
 0x4c9   :  { %2545 = vtanh.f32 %v456_v48 }
 0x4d3   :  { %v3018_v50 = vpop.permute.xlu0 %468 }
 0x4d4   :  { %vm470_vm6 = vcmp.eq.s32.totalorder %v3018_v50, 1 }
 0x4d5   :  { %v472_v18 = vsel %vm470_vm6, %v456_v48, %v347_v45 }
 0x4d6   :  { %v2546_v49 = vpop.eup %2545 }
 0x4d7   :  { %459 = vrot.lane.b32.xlu1 %v2546_v49, %s2796_s1  ;;  %v2802_v49 = vmov 3  }
 0x549   :  { %v460_v51 = vpop.permute.xlu1 %459 }
 0x54a   :  { %v3020_v52 = vmul.f32 %v2544_v35, %v460_v51 }
 0x54c   :  { %v471_v53 = vsel %vm470_vm6, %v3020_v52, %v2992_v4 }
 0x54d   :  { %475 = vrot.lane.b32.xlu1 %v471_v53, %s2797_s24 }
 0x5bf   :  { %v476_v54 = vpop.permute.xlu1 %475 }
 0x5c0   :  { %2434 = vmatmul.mubr.msk.f32.vlgmr.msra.gmra.mxu0 %vm238_vm4, %v476_v54 }
 0x5c1   :  { %744 = vmatpush1.msra.mxu0 %v2891_v7  ;;  %783 = vmatprep.mubr.f32.mxu0 %v2794_v0 }
 0x5c2   :  { %745 = vmatprep.subr.mxu0 %v2894_v8 }
 0x5c3   :  { %746 = vmatpush1.msra.mxu0 %v2900_v9 }
 0x5c4   :  { %747 = vmatprep.subr.mxu0 %v2907_v11 }
 0x5c5   :  { %748 = vmatpush1.msra.mxu0 %v2910_v12 }
 0x5c6   :  { %749 = vmatprep.subr.mxu0 %v2914_v13 }
 0x5c7   :  { %750 = vmatpush1.msra.mxu0 %v2919_v14 }
 0x5c8   :  { %983 = vmatprep.subr.mxu0 %v2886_v5 }
 0x680   :  { %v545_v55 = vpop.f32.mrf.mxu0 }
 0x681   :  { %v550_v57 = vadd.f32 %v545_v55, %v2973_v36 }
 0x682   :  { %v547_v56 = vpop.f32.mrf.mxu0 }
 0x683   :  { %v551_v58 = vadd.f32 %v547_v56, %v2979_v42 }
 0x685   :  { %v552_v59 = vsel %vm104_vm1, %v550_v57, %v551_v58 }
 0x686   :  { %2547 = vtanh.f32 %v552_v59  ;;  %v2435_v62 = vmul.f32 -1.442695, %v552_v59 }
 0x688   :  { %2549 = vpow2.f32 %v2435_v62 }
 0x693   :  { %v2548_v61 = vpop.eup %2547 }
 0x694   :  { %562 = vrot.lane.b32.xlu0 %v2548_v61, %s2796_s1 }
 0x695   :  { %v2550_v63 = vpop.eup %2549 }
 0x696   :  { %v556_v2 = vadd.f32 1.0, %v2550_v63 }
 0x698   :  { %577 = vrot.lane.b32.xlu0 %v2958_v24, %s2801_s26  ;;  %2551 = vrcp.f32 %v556_v2 }
 0x6a5   :  { %v2552_v3 = vpop.eup %2551 }
 0x6a6   :  { %v560_v19 = vmul.f32 %v2552_v3, %v472_v18 }
 0x706   :  { %v563_v10 = vpop.permute.xlu0 %562 }
 0x707   :  { %v565_v15 = vmul.f32 %v2552_v3, %v563_v10 }
 0x709   :  { %567 = vrot.lane.b32.xlu1 %v565_v15, %s2797_s24 }
 0x70a   :  { %v578_v16 = vpop.permute.xlu0 %577 }
 0x70b   :  { %vm579_vm7 = vcmp.lt.s32.totalorder %v2955_v22, %v578_v16 }
 0x70c   :  { %v580_v17 = vsel %vm579_vm7, 1, %v2795_v21  ;;  %vm1305_vm7 = vcmask 523264  }
 0x70d   :  { %582 = vperm.xlu1 %2524, %v580_v17  }
 0x711   :  { %2525 = vset.pattern.permute.xlu1 %v2802_v49 }
 0x77b   :  { %v568_v20 = vpop.permute.xlu1 %567 }
 0x77c   :  { %v570_v23 = vadd.f32 %v568_v20, %v560_v19 }
 0x77e   :  { %2553 = vtanh.f32 %v570_v23 }
 0x788   :  { %v3049_v28 = vpop.permute.xlu1 %582 }
 0x789   :  { %vm584_vm8 = vcmp.eq.s32.totalorder %v3049_v28, 1 }
 0x78a   :  { %v586_v58 = vsel %vm584_vm8, %v570_v23, %v472_v18  ;;  %v2804_v23 = vmov 4  }
 0x78b   :  { %v2554_v25 = vpop.eup %2553 }
 0x78c   :  { %573 = vrot.lane.b32.xlu0 %v2554_v25, %s2796_s1 }
 0x7fe   :  { %v574_v30 = vpop.permute.xlu0 %573 }
 0x7ff   :  { %v3051_v31 = vmul.f32 %v2552_v3, %v574_v30 }
 0x801   :  { %v585_v32 = vsel %vm584_vm8, %v3051_v31, %v471_v53 }
 0x802   :  { %589 = vrot.lane.b32.xlu1 %v585_v32, %s2797_s24 }
 0x874   :  { %v590_v33 = vpop.permute.xlu1 %589 }
 0x875   :  { %2436 = vmatmul.mubr.msk.f32.vlgmr.msra.gmra.mxu1 %vm238_vm4, %v590_v33 }
 0x876   :  { %858 = vmatpush1.msra.mxu1 %v2891_v7  ;;  %897 = vmatprep.mubr.f32.mxu1 %v2794_v0 }
 0x877   :  { %859 = vmatprep.subr.mxu1 %v2894_v8 }
 0x878   :  { %860 = vmatpush1.msra.mxu1 %v2900_v9 }
 0x879   :  { %861 = vmatprep.subr.mxu1 %v2907_v11 }
 0x87a   :  { %862 = vmatpush1.msra.mxu1 %v2910_v12 }
 0x87b   :  { %863 = vmatprep.subr.mxu1 %v2914_v13 }
 0x87c   :  { %864 = vmatpush1.msra.mxu1 %v2919_v14 }
 0x87d   :  { %1097 = vmatprep.subr.mxu1 %v2886_v5 }
 0x935   :  { %v659_v35 = vpop.f32.mrf.mxu1 }
 0x936   :  { %v665_v37 = vrot.slane %v659_v35, 4 }
 0x937   :  { %v661_v39 = vpop.f32.mrf.mxu1 }
 0x938   :  { %v667_v41 = vadd.f32 %v665_v37, %v2973_v36  ;;  %v669_v43 = vrot.slane %v661_v39, 4 }
 0x93a   :  { %v671_v45 = vadd.f32 %v669_v43, %v2979_v42  ;;  %v673_v46 = vrot.slane %v667_v41, 4 }
 0x93c   :  { %v676_v47 = vrot.slane %v671_v45, 4 }
 0x93e   :  { %v678_v48 = vsel %vm104_vm1, %v673_v46, %v676_v47 }
 0x93f   :  { %2555 = vtanh.f32 %v678_v48  ;;  %v2437_v5 = vmul.f32 -1.442695, %v678_v48 }
 0x941   :  { %2557 = vpow2.f32 %v2437_v5 }
 0x94c   :  { %v2556_v51 = vpop.eup %2555 }
 0x94d   :  { %688 = vrot.lane.b32.xlu0 %v2556_v51, %s2796_s1 }
 0x94e   :  { %v2558_v53 = vpop.eup %2557 }
 0x94f   :  { %v682_v36 = vadd.f32 1.0, %v2558_v53 }
 0x951   :  { %703 = vrot.lane.b32.xlu0 %v2958_v24, %s2803_s27  ;;  %2559 = vrcp.f32 %v682_v36 }
 0x95e   :  { %v2560_v54 = vpop.eup %2559 }
 0x95f   :  { %v686_v59 = vmul.f32 %v2560_v54, %v586_v58 }
 0x9bf   :  { %v689_v42 = vpop.permute.xlu0 %688 }
 0x9c0   :  { %v691_v55 = vmul.f32 %v2560_v54, %v689_v42 }
 0x9c2   :  { %693 = vrot.lane.b32.xlu1 %v691_v55, %s2797_s24 }
 0x9c3   :  { %v704_v56 = vpop.permute.xlu0 %703 }
 0x9c4   :  { %vm705_vm9 = vcmp.lt.s32.totalorder %v2955_v22, %v704_v56 }
 0x9c5   :  { %v706_v57 = vsel %vm705_vm9, 1, %v2795_v21 }
 0x9c6   :  { %708 = vperm.xlu1 %2525, %v706_v57  }
 0x9ca   :  { %2526 = vset.pattern.permute.xlu1 %v2804_v23 }
 0xa34   :  { %v694_v60 = vpop.permute.xlu1 %693 }
 0xa35   :  { %v696_v61 = vadd.f32 %v694_v60, %v686_v59 }
 0xa37   :  { %2561 = vtanh.f32 %v696_v61 }
 0xa41   :  { %v3079_v63 = vpop.permute.xlu1 %708 }
 0xa42   :  { %vm710_vm10 = vcmp.eq.s32.totalorder %v3079_v63, 1 }
 0xa43   :  { %v712_v45 = vsel %vm710_vm10, %v696_v61, %v586_v58 }
 0xa44   :  { %v2562_v62 = vpop.eup %2561 }
 0xa45   :  { %699 = vrot.lane.b32.xlu0 %v2562_v62, %s2796_s1 }
 0xab7   :  { %v700_v2 = vpop.permute.xlu0 %699 }
 0xab8   :  { %v3081_v3 = vmul.f32 %v2560_v54, %v700_v2 }
 0xaba   :  { %v711_v10 = vsel %vm710_vm10, %v3081_v3, %v585_v32 }
 0xabb   :  { %715 = vrot.lane.b32.xlu1 %v711_v10, %s2797_s24 }
 0xb2d   :  { %v716_v15 = vpop.permute.xlu1 %715 }
 0xb2e   :  { %2438 = vmatmul.mubr.msk.f32.vlgmr.msra.gmra.mxu0 %vm238_vm4, %v716_v15 }
 0xb2f   :  { %984 = vmatpush1.msra.mxu0 %v2891_v7  ;;  %1023 = vmatprep.mubr.f32.mxu0 %v2794_v0 }
 0xb30   :  { %985 = vmatprep.subr.mxu0 %v2894_v8 }
 0xb31   :  { %986 = vmatpush1.msra.mxu0 %v2900_v9 }
 0xb32   :  { %987 = vmatprep.subr.mxu0 %v2907_v11 }
 0xb33   :  { %988 = vmatpush1.msra.mxu0 %v2910_v12 }
 0xb34   :  { %989 = vmatprep.subr.mxu0 %v2914_v13 }
 0xb35   :  { %990 = vmatpush1.msra.mxu0 %v2919_v14 }
 0xbee   :  { %v785_v16 = vpop.f32.mrf.mxu0 }
 0xbef   :  { %v790_v18 = vadd.f32 %v785_v16, %v2977_v40 }
 0xbf0   :  { %v787_v17 = vpop.f32.mrf.mxu0 }
 0xbf1   :  { %v791_v19 = vadd.f32 %v787_v17, %v2975_v38 }
 0xbf3   :  { %v792_v20 = vsel %vm104_vm1, %v790_v18, %v791_v19 }
 0xbf4   :  { %2563 = vtanh.f32 %v792_v20  ;;  %v2439_v30 = vmul.f32 -1.442695, %v792_v20 }
 0xbf6   :  { %2565 = vpow2.f32 %v2439_v30 }
 0xc01   :  { %v2564_v25 = vpop.eup %2563 }
 0xc02   :  { %802 = vrot.lane.b32.xlu0 %v2564_v25, %s2796_s1 }
 0xc03   :  { %v2566_v32 = vpop.eup %2565 }
 0xc04   :  { %v796_v33 = vadd.f32 1.0, %v2566_v32 }
 0xc06   :  { %817 = vrot.lane.b32.xlu0 %v2958_v24, %s2805_s28  ;;  %2567 = vrcp.f32 %v796_v33 }
 0xc13   :  { %v2568_v35 = vpop.eup %2567 }
 0xc14   :  { %v800_v46 = vmul.f32 %v2568_v35, %v712_v45 }
 0xc74   :  { %v803_v37 = vpop.permute.xlu0 %802 }
 0xc75   :  { %v805_v39 = vmul.f32 %v2568_v35, %v803_v37 }
 0xc77   :  { %807 = vrot.lane.b32.xlu1 %v805_v39, %s2797_s24 }
 0xc78   :  { %v818_v41 = vpop.permute.xlu0 %817 }
 0xc79   :  { %vm819_vm11 = vcmp.lt.s32.totalorder %v2955_v22, %v818_v41  ;;  %v2808_v41 = vmov 6  }
 0xc7a   :  { %v820_v43 = vsel %vm819_vm11, 1, %v2795_v21 }
 0xc7b   :  { %822 = vperm.xlu1 %2526, %v820_v43  }
 0xce9   :  { %v808_v47 = vpop.permute.xlu1 %807 }
 0xcea   :  { %v810_v48 = vadd.f32 %v808_v47, %v800_v46 }
 0xcec   :  { %2569 = vtanh.f32 %v810_v48 }
 0xcf6   :  { %v3108_v51 = vpop.permute.xlu1 %822 }
 0xcf7   :  { %vm824_vm12 = vcmp.eq.s32.totalorder %v3108_v51, 1 }
 0xcf9   :  { %v2570_v49 = vpop.eup %2569 }
 0xcfa   :  { %813 = vrot.lane.b32.xlu0 %v2570_v49, %s2796_s1 }
 0xd6c   :  { %v814_v5 = vpop.permute.xlu0 %813 }
 0xd6d   :  { %v3110_v53 = vmul.f32 %v2568_v35, %v814_v5 }
 0xd6f   :  { %v825_v36 = vsel %vm824_vm12, %v3110_v53, %v711_v10  ;;  %v826_v10 = vsel %vm824_vm12, %v810_v48, %v712_v45 }
 0xd70   :  { %829 = vrot.lane.b32.xlu1 %v825_v36, %s2797_s24 }
 0xde2   :  { %v830_v54 = vpop.permute.xlu1 %829 }
 0xde3   :  { %2440 = vmatmul.mubr.msk.f32.vlgmr.msra.gmra.mxu1 %vm238_vm4, %v830_v54 }
 0xde4   :  { %1098 = vmatpush1.msra.mxu1 %v2891_v7  ;;  %1137 = vmatprep.mubr.f32.mxu1 %v2794_v0 }
 0xde5   :  { %1099 = vmatprep.subr.mxu1 %v2894_v8 }
 0xde6   :  { %1100 = vmatpush1.msra.mxu1 %v2900_v9 }
 0xde7   :  { %1101 = vmatprep.subr.mxu1 %v2907_v11  ;;  %v2806_v11 = vmov 5  }
 0xde8   :  { %1102 = vmatpush1.msra.mxu1 %v2910_v12  ;;  %2527 = vset.pattern.permute.xlu1 %v2806_v11 }
 0xde9   :  { %1103 = vmatprep.subr.mxu1 %v2914_v13 }
 0xdea   :  { %1104 = vmatpush1.msra.mxu1 %v2919_v14 }
 0xea3   :  { %v899_v42 = vpop.f32.mrf.mxu1 }
 0xea4   :  { %v905_v55 = vrot.slane %v899_v42, 4 }
 0xea5   :  { %v901_v56 = vpop.f32.mrf.mxu1 }
 0xea6   :  { %v907_v57 = vadd.f32 %v905_v55, %v2977_v40  ;;  %v909_v7 = vrot.slane %v901_v56, 4 }
 0xea8   :  { %v911_v58 = vadd.f32 %v909_v7, %v2975_v38  ;;  %v913_v59 = vrot.slane %v907_v57, 4 }
 0xeaa   :  { %v916_v8 = vrot.slane %v911_v58, 4 }
 0xeac   :  { %v918_v9 = vsel %vm104_vm1, %v913_v59, %v916_v8 }
 0xead   :  { %2571 = vtanh.f32 %v918_v9  ;;  %v2441_v13 = vmul.f32 -1.442695, %v918_v9 }
 0xeaf   :  { %2573 = vpow2.f32 %v2441_v13 }
 0xeba   :  { %v2572_v12 = vpop.eup %2571 }
 0xebb   :  { %928 = vrot.lane.b32.xlu0 %v2572_v12, %s2796_s1 }
 0xebc   :  { %v2574_v14 = vpop.eup %2573 }
 0xebd   :  { %v922_v40 = vadd.f32 1.0, %v2574_v14 }
 0xebf   :  { %943 = vrot.lane.b32.xlu0 %v2958_v24, %s2807_s29  ;;  %2575 = vrcp.f32 %v922_v40 }
 0xecc   :  { %v2576_v60 = vpop.eup %2575 }
 0xecd   :  { %v926_v15 = vmul.f32 %v2576_v60, %v826_v10 }
 0xf2d   :  { %v929_v38 = vpop.permute.xlu0 %928 }
 0xf2e   :  { %v931_v61 = vmul.f32 %v2576_v60, %v929_v38 }
 0xf30   :  { %933 = vrot.lane.b32.xlu1 %v931_v61, %s2797_s24 }
 0xf31   :  { %v944_v62 = vpop.permute.xlu0 %943 }
 0xf32   :  { %vm945_vm13 = vcmp.lt.s32.totalorder %v2955_v22, %v944_v62 }
 0xf33   :  { %v946_v2 = vsel %vm945_vm13, 1, %v2795_v21 }
 0xf34   :  { %948 = vperm.xlu1 %2527, %v946_v2  }
 0xf38   :  { %2528 = vset.pattern.permute.xlu1 %v2808_v41 }
 0xfa2   :  { %v934_v16 = vpop.permute.xlu1 %933 }
 0xfa3   :  { %v936_v17 = vadd.f32 %v934_v16, %v926_v15 }
 0xfa5   :  { %2577 = vtanh.f32 %v936_v17 }
 0xfaf   :  { %v3137_v19 = vpop.permute.xlu1 %948 }
 0xfb0   :  { %vm950_vm14 = vcmp.eq.s32.totalorder %v3137_v19, 1 }
 0xfb1   :  { %v952_v42 = vsel %vm950_vm14, %v936_v17, %v826_v10  ;;  %v2810_v10 = vmov 7  }
 0xfb2   :  { %v2578_v18 = vpop.eup %2577  ;;  %2530 = vset.pattern.permute.xlu0 %v2810_v10 }
 0xfb3   :  { %939 = vrot.lane.b32.xlu0 %v2578_v18, %s2796_s1 }
0x1025   :  { %v940_v20 = vpop.permute.xlu0 %939 }
0x1026   :  { %v3139_v23 = vmul.f32 %v2576_v60, %v940_v20 }
0x1028   :  { %v951_v25 = vsel %vm950_vm14, %v3139_v23, %v825_v36 }
0x1029   :  { %955 = vrot.lane.b32.xlu1 %v951_v25, %s2797_s24 }
0x109b   :  { %v956_v30 = vpop.permute.xlu1 %955 }
0x109c   :  { %2442 = vmatmul.mubr.msk.f32.vlgmr.msra.gmra.mxu0 %vm238_vm4, %v956_v30 }
0x109d   :  { %1382 = vmatprep.mubr.f32.mxu0 %v2794_v0 }
0x115c   :  { %v1025_v32 = vpop.f32.mrf.mxu0 }
0x115d   :  { %v1030_v35 = vadd.f32 %v1025_v32, %v2981_v44  ;;  %v3184_v32 = vsel %vm470_vm6, %v3020_v52, 0.0 }
0x115e   :  { %v1027_v33 = vpop.f32.mrf.mxu0 }
0x115f   :  { %v1031_v37 = vadd.f32 %v1027_v33, %v2971_v34 }
0x1161   :  { %v1032_v39 = vsel %vm104_vm1, %v1030_v35, %v1031_v37 }
0x1162   :  { %2579 = vtanh.f32 %v1032_v39  ;;  %v2443_v45 = vmul.f32 -1.442695, %v1032_v39 }
0x1164   :  { %2581 = vpow2.f32 %v2443_v45  ;;  %v1292_v45 = vld [vmem:[%s3558_s5 + $0x78] sm:$0xff] }
0x1165   :  { %1334 = vmatprep.subr.mxu0 %v1292_v45 }
0x116f   :  { %v2580_v43 = vpop.eup %2579 }
0x1170   :  { %1042 = vrot.lane.b32.xlu0 %v2580_v43, %s2796_s1 }
0x1171   :  { %v2582_v46 = vpop.eup %2581 }
0x1172   :  { %v1036_v47 = vadd.f32 1.0, %v2582_v46  ;;  %v1291_v46 = vld [vmem:[%s3558_s5 + $0x70] sm:$0xff] }
0x1173   :  { %1335 = vmatpush1.msra.mxu0 %v1291_v46 }
0x1174   :  { %1057 = vrot.lane.b32.xlu0 %v2958_v24, %s2809_s3  ;;  %2583 = vrcp.f32 %v1036_v47  ;;  %v1290_v47 = vld [vmem:[%s3558_s5 + $0x68] sm:$0xff]  ;;  %s2813_s3 = smov [#allocation11]  }
0x1175   :  { %1336 = vmatprep.subr.mxu0 %v1290_v47 }
0x1181   :  { %v2584_v48 = vpop.eup %2583 }
0x1182   :  { %v1040_v55 = vmul.f32 %v2584_v48, %v952_v42 }
0x11e2   :  { %v1043_v49 = vpop.permute.xlu0 %1042 }
0x11e3   :  { %v1045_v5 = vmul.f32 %v2584_v48, %v1043_v49  ;;  %v1289_v49 = vld [vmem:[%s3558_s5 + $0x60] sm:$0xff] }
0x11e4   :  { %1337 = vmatpush1.msra.mxu0 %v1289_v49 }
0x11e5   :  { %1047 = vrot.lane.b32.xlu1 %v1045_v5, %s2797_s24  ;;  %v1288_v5 = vld [vmem:[%s3558_s5 + $0x58] sm:$0xff] }
0x11e6   :  { %v1058_v36 = vpop.permute.xlu0 %1057  ;;  %1338 = vmatprep.subr.mxu0 %v1288_v5 }
0x11e7   :  { %vm1059_vm15 = vcmp.lt.s32.totalorder %v2955_v22, %v1058_v36  ;;  %v1287_v36 = vld [vmem:[%s3558_s5 + $0x50] sm:$0xff] }
0x11e8   :  { %v1060_v54 = vsel %vm1059_vm15, 1, %v2795_v21  ;;  %1339 = vmatpush1.msra.mxu0 %v1287_v36 }
0x11e9   :  { %1062 = vperm.xlu1 %2528, %v1060_v54   ;;  %v1286_v54 = vld [vmem:[%s3558_s5 + $0x48] sm:$0xff] }
0x11ea   :  { %1340 = vmatprep.subr.mxu0 %v1286_v54 }
0x11ed   :  { %2529 = vset.pattern.permute.xlu1 %v2810_v10 }
0x1257   :  { %v1048_v56 = vpop.permute.xlu1 %1047 }
0x1258   :  { %v1050_v57 = vadd.f32 %v1048_v56, %v1040_v55  ;;  %v1285_v55 = vld [vmem:[%s3558_s5 + $0x40] sm:$0xff]  ;;  %v1284_v56 = vld [vmem:[%s3558_s5 + $0x38] sm:$0xff] }
0x1259   :  { %1341 = vmatpush1.msra.mxu0 %v1285_v55 }
0x125a   :  { %2585 = vtanh.f32 %v1050_v57  ;;  %1342 = vmatprep.subr.mxu0 %v1284_v56 }
0x1264   :  { %v3159_v58 = vpop.permute.xlu1 %1062 }
0x1265   :  { %vm1064_vm0 = vcmp.eq.s32.totalorder %v3159_v58, 1  ;;  %v2325_v58 = vld [vmem:[%s3561_s8 + $0x28] sm:$0xff] }
0x1266   :  { %v1066_v52 = vsel %vm1064_vm0, %v1050_v57, %v952_v42  ;;  %v3238_v42 = vld [vmem:[#allocation8 + $0x30] sm:$0xff] }
0x1267   :  { %v2586_v7 = vpop.eup %2585  ;;  %v1283_v57 = vld [vmem:[%s3558_s5 + $0x30] sm:$0xff] }
0x1268   :  { %1053 = vrot.lane.b32.xlu0 %v2586_v7, %s2796_s1  ;;  %v1282_v7 = vld [vmem:[%s3558_s5 + $0x28] sm:$0xff]  ;;  %1343 = vmatpush1.msra.mxu0 %v1283_v57 }
0x1269   :  { %1344 = vmatprep.subr.mxu0 %v1282_v7  ;;  %v1293_v7 = vld [vmem:[#allocation10] sm:$0x3] }
0x12da   :  { %v1054_v59 = vpop.permute.xlu0 %1053 }
0x12db   :  { %v1056_v8 = vmul.f32 %v2584_v48, %v1054_v59  ;;  %v3219_v48 = vsel %vm710_vm10, %v3081_v3, 0.0  ;;  %v3232_v3 = vld [vmem:[#allocation8 + $0x38] sm:$0xff] }
0x12dc   :  { %1439 = vmatprep.subr.mxu1 %v3232_v3  ;;  %v1281_v59 = vld [vmem:[%s3558_s5 + $0x20] sm:$0xff] }
0x12dd   :  { %v1065_v9 = vsel %vm1064_vm0, %v1056_v8, %v951_v25  ;;  %v3202_v43 = vsel %vm1064_vm0, %v1056_v8, 0.0  ;;  %1345 = vmatpush1.msra.mxu0 %v1281_v59  ;;  %v1280_v8 = vld [vmem:[%s3558_s5 + $0x18] sm:$0xff]  ;;  %v1302_v59 = vrot.slane %v1293_v7, %v124_v27 }
0x12de   :  { %1069 = vrot.lane.b32.xlu1 %v1065_v9, %s2797_s24  ;;  %v3262_v9 = vld [vmem:[#allocation8 + $0x28] sm:$0xff]  ;;  %1346 = vmatprep.subr.mxu0 %v1280_v8 }
0x1350   :  { %v1070_v11 = vpop.permute.xlu1 %1069 }
0x1351   :  { %2444 = vmatmul.mubr.msk.f32.vlgmr.msra.gmra.mxu1 %vm238_vm4, %v1070_v11  ;;  %v1279_v11 = vld [vmem:[%s3558_s5 + $0x10] sm:$0xff] }
0x1352   :  { %1479 = vmatprep.mubr.f32.mxu1 %v2794_v0  ;;  %1440 = vmatpush1.msra.mxu1 %v3238_v42 }
0x1353   :  { %1441 = vmatprep.subr.mxu1 %v3262_v9  ;;  %1347 = vmatpush1.msra.mxu0 %v1279_v11 }
0x1411   :  { %v1139_v12 = vpop.f32.mrf.mxu1 }
0x1412   :  { %v1145_v13 = vrot.slane %v1139_v12, 4  ;;  %v3268_v12 = vld [vmem:[#allocation8 + $0x20] sm:$0xff] }
0x1413   :  { %v1141_v14 = vpop.f32.mrf.mxu1  ;;  %1442 = vmatpush1.msra.mxu1 %v3268_v12 }
0x1414   :  { %v1147_v40 = vadd.f32 %v1145_v13, %v2981_v44  ;;  %v1149_v60 = vrot.slane %v1141_v14, 4  ;;  %v1278_v13 = vld [vmem:[%s3558_s5 + $0x8] sm:$0xff]  ;;  %v3274_v14 = vld [vmem:[#allocation8 + $0x18] sm:$0xff] }
0x1415   :  { %1348 = vmatprep.subr.mxu0 %v1278_v13  ;;  %1443 = vmatprep.subr.mxu1 %v3274_v14  ;;  %v1298_v13 = vrot.slane %v1293_v7, %v120_v29 }
0x1416   :  { %v1151_v38 = vadd.f32 %v1149_v60, %v2971_v34  ;;  %v1153_v61 = vrot.slane %v1147_v40, 4  ;;  %v1277_v40 = vld [vmem:[%s3558_s5] sm:$0xff]  ;;  %v3280_v60 = vld [vmem:[#allocation8 + $0x10] sm:$0xff] }
0x1417   :  { %1349 = vmatpush1.msra.mxu0 %v1277_v40  ;;  %1444 = vmatpush1.msra.mxu1 %v3280_v60 }
0x1418   :  { %v1156_v62 = vrot.slane %v1151_v38, 4  ;;  %v3283_v38 = vld [vmem:[#allocation8 + $0x8] sm:$0xff]  ;;  %1771 = vmatprep.subr.mxu0 %v3232_v3 }
0x1419   :  { %1445 = vmatprep.subr.mxu1 %v3283_v38 }
0x141a   :  { %v1158_v2 = vsel %vm104_vm1, %v1153_v61, %v1156_v62  ;;  %v3286_v61 = vld [vmem:[#allocation8] sm:$0xff] }
0x141b   :  { %2587 = vtanh.f32 %v1158_v2  ;;  %v2445_v16 = vmul.f32 -1.442695, %v1158_v2  ;;  %1446 = vmatpush1.msra.mxu1 %v3286_v61 }
0x141c   :  { %1480 = vmatmul.mubr.f32.vlgmr.msra.gmra.mxu1 %v2794_v0  ;;  %1545 = vmatprep.subr.mxu1 %v3232_v3 }
0x141d   :  { %2589 = vpow2.f32 %v2445_v16  ;;  %1546 = vmatpush1.msra.mxu1 %v3238_v42  ;;  %1585 = vmatprep.mubr.f32.mxu1 %v2794_v0 }
0x141e   :  { %1547 = vmatprep.subr.mxu1 %v3262_v9 }
0x141f   :  { %1548 = vmatpush1.msra.mxu1 %v3268_v12 }
0x1420   :  { %1549 = vmatprep.subr.mxu1 %v3274_v14 }
0x1421   :  { %1550 = vmatpush1.msra.mxu1 %v3280_v60 }
0x1422   :  { %1551 = vmatprep.subr.mxu1 %v3283_v38 }
0x1423   :  { %1552 = vmatpush1.msra.mxu1 %v3286_v61 }
0x1424   :  { %1664 = vmatprep.subr.mxu1 %v3232_v3 }
0x1428   :  { %v2588_v15 = vpop.eup %2587 }
0x1429   :  { %1168 = vrot.lane.b32.xlu0 %v2588_v15, %s2796_s1 }
0x142a   :  { %v2590_v44 = vpop.eup %2589 }
0x142b   :  { %v1162_v17 = vadd.f32 1.0, %v2590_v44  ;;  %v1232_v44 = vrot.slane %v3219_v48, 4 }
0x142d   :  { %1183 = vrot.lane.b32.xlu0 %v2958_v24, %s2811_s30  ;;  %2591 = vrcp.f32 %v1162_v17  ;;  %v827_v24 = vsel %vm824_vm12, %v3110_v53, 0.0  ;;  %v587_v53 = vsel %vm584_vm8, %v3051_v31, 0.0  ;;  %v1204_v31 = vrot.slane %v3202_v43, 4  ;;  %s2416_s30 = sshll.u32 %s2813_s3, 4  ;;  %s2417_s30 = int_to_ptr.vmem [resolvable:$true] %s2416_s30 }
0x142e   :  { %v1224_v33 = vrot.slane %v827_v24, 4  ;;  %v1240_v35 = vrot.slane %v587_v53, 4  ;;  %v1256_v17 = vrot.slane %v2992_v4, 4  ;;  %p2764_p12 = scmp.lt.s32.totalorder %s2417_s30, %s2417_s30 }
0x143a   :  { %v3172_v34 = vpop.eup %2591 }
0x143b   :  { %v1166_v37 = vmul.f32 %v3172_v34, %v1066_v52 }
0x149b   :  { %v1169_v18 = vpop.permute.xlu0 %1168 }
0x149c   :  { %v1171_v20 = vmul.f32 %v3172_v34, %v1169_v18 }
0x149e   :  { %1173 = vrot.lane.b32.xlu1 %v1171_v20, %s2797_s24 }
0x149f   :  { %v1184_v25 = vpop.permute.xlu0 %1183 }
0x14a0   :  { %vm1185_vm2 = vcmp.lt.s32.totalorder %v2955_v22, %v1184_v25  ;;  %v953_v22 = vsel %vm950_vm14, %v3139_v23, 0.0 }
0x14a1   :  { %v1186_v30 = vsel %vm1185_vm2, 1, %v2795_v21  ;;  %v1214_v21 = vrot.slane %v953_v22, 4 }
0x14a2   :  { %1188 = vperm.xlu1 %2529, %v1186_v30  }
0x14a6   :  { %1200 = vrot.lane.b32.xlu1 %v3184_v32, %s2797_s24 }
0x14aa   :  { %1225 = vrot.lane.b32.xlu1 %v1224_v33, %s2796_s1 }
0x14ae   :  { %1215 = vrot.lane.b32.xlu1 %v1214_v21, %s2796_s1 }
0x14b2   :  { %1241 = vrot.lane.b32.xlu1 %v1240_v35, %s2796_s1 }
0x14dc   :  { %v1481_v26 = vpop.f32.mrf.mxu1 }
0x1510   :  { %v1174_v39 = vpop.permute.xlu1 %1173 }
0x1511   :  { %v1176_v41 = vadd.f32 %v1174_v39, %v1166_v37 }
0x1513   :  { %2593 = vtanh.f32 %v1176_v41 }
0x151d   :  { %v3294_v62 = vpop.permute.xlu1 %1188 }
0x151e   :  { %vm1190_vm5 = vcmp.eq.s32.totalorder %v3294_v62, 1 }
0x1520   :  { %v2594_v23 = vpop.eup %2593 }
0x1521   :  { %1179 = vrot.lane.b32.xlu0 %v2594_v23, %s2796_s1  ;;  %v1201_v18 = vpop.permute.xlu1 %1200 }
0x1525   :  { %1205 = vrot.lane.b32.xlu0 %v1204_v31, %s2796_s1  ;;  %v1226_v25 = vpop.permute.xlu1 %1225 }
0x1529   :  { %1220 = vrot.lane.b32.xlu0 %v3219_v48, %s2797_s24 }
0x152d   :  { %1210 = vrot.lane.b32.xlu0 %v587_v53, %s2797_s24 }
0x1531   :  { %1237 = vrot.lane.b32.xlu0 %v953_v22, %s2797_s24 }
0x1535   :  { %1229 = vrot.lane.b32.xlu0 %v827_v24, %s2797_s24  ;;  %v1216_v24 = vpop.permute.xlu1 %1215 }
0x1539   :  { %v1242_v22 = vpop.permute.xlu1 %1241 }
0x1593   :  { %v1180_v2 = vpop.permute.xlu0 %1179 }
0x1594   :  { %v1182_v10 = vmul.f32 %v3172_v34, %v1180_v2  ;;  %v1248_v34 = vrot.slane %v3184_v32, 4 }
0x1596   :  { %v1191_v15 = vsel %vm1190_vm5, %v1182_v10, 0.0 }
0x1597   :  { %1253 = vrot.lane.b32.xlu0 %v1191_v15, %s2797_s24  ;;  %v1194_v16 = vrot.slane %v1191_v15, 4  ;;  %v1206_v20 = vpop.permute.xlu0 %1205 }
0x1598   :  { %v1208_v53 = vsel %vm238_vm4, %v1201_v18, %v1206_v20 }
0x1599   :  { %1195 = vrot.lane.b32.xlu1 %v1194_v16, %s2796_s1  ;;  %v1262_v35 = vrot.slane %v1208_v53, 4 }
0x159b   :  { %1245 = vrot.lane.b32.xlu0 %v3202_v43, %s2797_s24  ;;  %v1221_v30 = vpop.permute.xlu0 %1220 }
0x159c   :  { %v1228_v4 = vsel %vm238_vm4, %v1221_v30, %v1226_v25 }
0x159d   :  { %1233 = vrot.lane.b32.xlu1 %v1232_v44, %s2796_s1  ;;  %v1265_v23 = vrot.slane %v1228_v4, 4 }
0x159f   :  { %v1211_v33 = vpop.permute.xlu0 %1210 }
0x15a0   :  { %v1218_v41 = vsel %vm238_vm4, %v1211_v33, %v1216_v24  ;;  %v1483_v24 = vpop.f32.mrf.mxu1 }
0x15a1   :  { %1257 = vrot.lane.b32.xlu1 %v1256_v17, %s2796_s1 }
0x15a3   :  { %v1238_v21 = vpop.permute.xlu0 %1237 }
0x15a4   :  { %v1244_v31 = vsel %vm238_vm4, %v1238_v21, %v1242_v22 }
0x15a5   :  { %1249 = vrot.lane.b32.xlu1 %v1248_v34, %s2796_s1  ;;  %v1268_v47 = vrot.slane %v1244_v31, 4 }
0x15a7   :  { %v1230_v37 = vpop.permute.xlu0 %1229 }
0x1609   :  { %v1254_v45 = vpop.permute.xlu0 %1253 }
0x160b   :  { %v1196_v52 = vpop.permute.xlu1 %1195 }
0x160c   :  { %v1198_v32 = vsel %vm238_vm4, %v2996_v6, %v1196_v52  ;;  %v1274_v6 = vsel %vm104_vm1, %v1218_v41, %v1265_v23 }
0x160d   :  { %v1273_v39 = vsel %vm104_vm1, %v1198_v32, %v1262_v35  ;;  %v1246_v36 = vpop.permute.xlu0 %1245 }
0x160e   :  { %2446 = vmatmul.mubr.msk.f32.vlgmr.msra.gmra.mxu0 %vm1305_vm7, %v1273_v39 }
0x160f   :  { %v1234_v43 = vpop.permute.xlu1 %1233  ;;  %1388 = vmatprep.mubr.f32.mxu0 %v2794_v0  ;;  %1772 = vmatpush1.msra.mxu0 %v3238_v42 }
0x1610   :  { %1773 = vmatprep.subr.mxu0 %v3262_v9  ;;  %v1236_v46 = vsel %vm238_vm4, %v1230_v37, %v1234_v43 }
0x1611   :  { %1774 = vmatpush1.msra.mxu0 %v3268_v12  ;;  %v1275_v5 = vsel %vm104_vm1, %v1236_v46, %v1268_v47 }
0x1612   :  { %2447 = vmatmul.mubr.msk.f32.gmra.mxu0 %vm1305_vm7, %v1274_v6  ;;  %1775 = vmatprep.subr.mxu0 %v3274_v14 }
0x1613   :  { %v1258_v48 = vpop.permute.xlu1 %1257  ;;  %1394 = vmatprep.mubr.f32.mxu0 %v2794_v0  ;;  %1776 = vmatpush1.msra.mxu0 %v3280_v60 }
0x1614   :  { %v1260_v49 = vsel %vm238_vm4, %v1254_v45, %v1258_v48  ;;  %1777 = vmatprep.subr.mxu0 %v3283_v38 }
0x1615   :  { %1778 = vmatpush1.msra.mxu0 %v3286_v61  ;;  %v1271_v54 = vrot.slane %v1260_v49, 4 }
0x1616   :  { %2448 = vmatmul.mubr.msk.f32.gmra.mxu0 %vm1305_vm7, %v1275_v5  ;;  %1997 = vmatprep.subr.mxu0 %v3232_v3 }
0x1617   :  { %v1250_v55 = vpop.permute.xlu1 %1249  ;;  %1400 = vmatprep.mubr.f32.mxu0 %v2794_v0 }
0x1618   :  { %v1252_v56 = vsel %vm238_vm4, %v1246_v36, %v1250_v55 }
0x1619   :  { %v1276_v57 = vsel %vm104_vm1, %v1252_v56, %v1271_v54 }
0x161a   :  { %2449 = vmatmul.mubr.msk.f32.gmra.mxu0 %vm1305_vm7, %v1276_v57 }
0x161b   :  { %1811 = vmatprep.mubr.f32.mxu0 %v2794_v0 }
0x16ce   :  { %v1384_v8 = vpop.f32.mrf.mxu0 }
0x16cf   :  { %v1385_v20 = vadd.f32 %v1384_v8, %v1298_v13 }
0x16d0   :  { %v1386_v11 = vpop.f32.mrf.mxu0 }
0x16d1   :  { %v3350_v40 = vadd.f32 %v1386_v11, %v1302_v59  ;;  %v1486_v33 = vadd.f32 %v1481_v26, %v1385_v20 }
0x16d2   :  { %v1390_v2 = vpop.f32.mrf.mxu0 }
0x16d3   :  { %v3352_v10 = vadd.f32 %v1390_v2, %v1298_v13 }
0x16d4   :  { %v1392_v15 = vpop.f32.mrf.mxu0 }
0x16d5   :  { %v3354_v16 = vadd.f32 %v1392_v15, %v1302_v59 }
0x16d6   :  { %v1396_v44 = vpop.f32.mrf.mxu0 }
0x16d7   :  { %v3356_v17 = vadd.f32 %v1396_v44, %v1298_v13 }
0x16d8   :  { %v1398_v34 = vpop.f32.mrf.mxu0 }
0x16d9   :  { %v3358_v18 = vadd.f32 %v1398_v34, %v1302_v59 }
0x16da   :  { %v1402_v27 = vpop.f32.mrf.mxu0 }
0x16db   :  { %v3360_v25 = vadd.f32 %v1402_v27, %v1298_v13 }
0x16dc   :  { %v1404_v29 = vpop.f32.mrf.mxu0 }
0x16dd   :  { %v1405_v30 = vadd.f32 %v1404_v29, %v1302_v59 }
0x16df   :  { %v1487_v22 = vadd.f32 %v1483_v24, %v1405_v30 }
0x16e1   :  { %v1488_v21 = vsel %vm104_vm1, %v1486_v33, %v1487_v22 }
0x16e2   :  { %2595 = vtanh.f32 %v1488_v21  ;;  %v2450_v35 = vmul.f32 -1.442695, %v1488_v21 }
0x16e4   :  { %2597 = vpow2.f32 %v2450_v35 }
0x16ef   :  { %v2596_v53 = vpop.eup %2595 }
0x16f0   :  { %1498 = vrot.lane.b32.xlu0 %v2596_v53, %s2796_s1 }
0x16f1   :  { %v2598_v52 = vpop.eup %2597 }
0x16f2   :  { %v1492_v4 = vadd.f32 1.0, %v2598_v52 }
0x16f4   :  { %2599 = vrcp.f32 %v1492_v4 }
0x1701   :  { %v2600_v32 = vpop.eup %2599 }
0x1702   :  { %v1496_v41 = vmul.f32 0.0, %v2600_v32 }
0x1762   :  { %v1499_v37 = vpop.permute.xlu0 %1498 }
0x1763   :  { %v1501_v39 = vmul.f32 %v2600_v32, %v1499_v37 }
0x1765   :  { %1503 = vrot.lane.b32.xlu1 %v1501_v39, %s2797_s24 }
0x17d7   :  { %v1504_v23 = vpop.permute.xlu1 %1503 }
0x17d8   :  { %v1506_v43 = vadd.f32 %v1504_v23, %v1496_v41 }
0x17da   :  { %2601 = vtanh.f32 %v1506_v43  ;;  %v1514_v34 = vsel %vm345_vm3, %v1506_v43, 0.0 }
0x17e7   :  { %v2602_v31 = vpop.eup %2601 }
0x17e8   :  { %1509 = vrot.lane.b32.xlu0 %v2602_v31, %s2796_s1 }
0x185a   :  { %v1510_v45 = vpop.permute.xlu0 %1509 }
0x185b   :  { %v1512_v6 = vmul.f32 %v2600_v32, %v1510_v45 }
0x185d   :  { %v3368_v46 = vsel %vm345_vm3, %v1512_v6, 0.0  ;;  %vm2408_vm3 = vcmask 52224  }
0x185e   :  { %1517 = vrot.lane.b32.xlu1 %v3368_v46, %s2797_s24 }
0x18d0   :  { %v1518_v47 = vpop.permute.xlu1 %1517 }
0x18d1   :  { %2451 = vmatmul.mubr.msk.f32.vlgmr.msra.gmra.mxu1 %vm238_vm4, %v1518_v47 }
0x18d2   :  { %1665 = vmatpush1.msra.mxu1 %v3238_v42  ;;  %1704 = vmatprep.mubr.f32.mxu1 %v2794_v0 }
0x18d3   :  { %1666 = vmatprep.subr.mxu1 %v3262_v9 }
0x18d4   :  { %1667 = vmatpush1.msra.mxu1 %v3268_v12 }
0x18d5   :  { %1668 = vmatprep.subr.mxu1 %v3274_v14 }
0x18d6   :  { %1669 = vmatpush1.msra.mxu1 %v3280_v60 }
0x18d7   :  { %1670 = vmatprep.subr.mxu1 %v3283_v38 }
0x18d8   :  { %1671 = vmatpush1.msra.mxu1 %v3286_v61 }
0x18d9   :  { %1890 = vmatprep.subr.mxu1 %v3232_v3 }
0x1991   :  { %v1587_v48 = vpop.f32.mrf.mxu1 }
0x1992   :  { %v1593_v49 = vrot.slane %v1587_v48, 4 }
0x1993   :  { %v1589_v5 = vpop.f32.mrf.mxu1 }
0x1994   :  { %v1595_v36 = vadd.f32 %v1593_v49, %v1385_v20  ;;  %v1597_v54 = vrot.slane %v1589_v5, 4 }
0x1996   :  { %v1599_v55 = vadd.f32 %v1597_v54, %v1405_v30  ;;  %v1601_v56 = vrot.slane %v1595_v36, 4 }
0x1998   :  { %v1604_v57 = vrot.slane %v1599_v55, 4 }
0x199a   :  { %v1606_v7 = vsel %vm104_vm1, %v1601_v56, %v1604_v57 }
0x199b   :  { %2603 = vtanh.f32 %v1606_v7  ;;  %v2452_v8 = vmul.f32 -1.442695, %v1606_v7 }
0x199d   :  { %2605 = vpow2.f32 %v2452_v8 }
0x19a8   :  { %v2604_v59 = vpop.eup %2603 }
0x19a9   :  { %1616 = vrot.lane.b32.xlu0 %v2604_v59, %s2796_s1 }
0x19aa   :  { %v2606_v11 = vpop.eup %2605 }
0x19ab   :  { %v1610_v13 = vadd.f32 1.0, %v2606_v11 }
0x19ad   :  { %2607 = vrcp.f32 %v1610_v13 }
0x19ba   :  { %v2608_v2 = vpop.eup %2607 }
0x19bb   :  { %v1614_v27 = vmul.f32 %v2608_v2, %v1514_v34 }
0x1a1b   :  { %v1617_v15 = vpop.permute.xlu0 %1616 }
0x1a1c   :  { %v1619_v44 = vmul.f32 %v2608_v2, %v1617_v15 }
0x1a1e   :  { %1621 = vrot.lane.b32.xlu1 %v1619_v44, %s2797_s24 }
0x1a90   :  { %v1622_v20 = vpop.permute.xlu1 %1621 }
0x1a91   :  { %v1624_v26 = vadd.f32 %v1622_v20, %v1614_v27 }
0x1a93   :  { %2609 = vtanh.f32 %v1624_v26  ;;  %v1632_v31 = vsel %vm470_vm6, %v1624_v26, %v1514_v34 }
0x1aa0   :  { %v2610_v29 = vpop.eup %2609 }
0x1aa1   :  { %1627 = vrot.lane.b32.xlu0 %v2610_v29, %s2796_s1 }
0x1b13   :  { %v1628_v30 = vpop.permute.xlu0 %1627 }
0x1b14   :  { %v1630_v24 = vmul.f32 %v2608_v2, %v1628_v30 }
0x1b16   :  { %v1631_v33 = vsel %vm470_vm6, %v1630_v24, %v3368_v46  ;;  %v1633_v49 = vsel %vm470_vm6, %v1630_v24, 0.0 }
0x1b17   :  { %1636 = vrot.lane.b32.xlu1 %v1631_v33, %s2797_s24  ;;  %v1634_v54 = vadd.f32 %v1633_v49, %v3368_v46 }
0x1b89   :  { %v1637_v22 = vpop.permute.xlu1 %1636 }
0x1b8a   :  { %2453 = vmatmul.mubr.msk.f32.vlgmr.msra.gmra.mxu1 %vm238_vm4, %v1637_v22 }
0x1b8b   :  { %1891 = vmatpush1.msra.mxu1 %v3238_v42  ;;  %1930 = vmatprep.mubr.f32.mxu1 %v2794_v0 }
0x1b8c   :  { %1892 = vmatprep.subr.mxu1 %v3262_v9 }
0x1b8d   :  { %1893 = vmatpush1.msra.mxu1 %v3268_v12 }
0x1b8e   :  { %1894 = vmatprep.subr.mxu1 %v3274_v14 }
0x1b8f   :  { %1895 = vmatpush1.msra.mxu1 %v3280_v60 }
0x1b90   :  { %1896 = vmatprep.subr.mxu1 %v3283_v38 }
0x1b91   :  { %1897 = vmatpush1.msra.mxu1 %v3286_v61 }
0x1b92   :  { %2116 = vmatprep.subr.mxu1 %v3232_v3 }
0x1c4a   :  { %v1706_v1 = vpop.f32.mrf.mxu1 }
0x1c4b   :  { %v1711_v53 = vadd.f32 %v1706_v1, %v3352_v10 }
0x1c4c   :  { %v1708_v21 = vpop.f32.mrf.mxu1 }
0x1c4d   :  { %v1712_v35 = vadd.f32 %v1708_v21, %v3358_v18 }
0x1c4f   :  { %v1713_v52 = vsel %vm104_vm1, %v1711_v53, %v1712_v35 }
0x1c50   :  { %2611 = vtanh.f32 %v1713_v52  ;;  %v2454_v32 = vmul.f32 -1.442695, %v1713_v52 }
0x1c52   :  { %2613 = vpow2.f32 %v2454_v32 }
0x1c5d   :  { %v2612_v4 = vpop.eup %2611 }
0x1c5e   :  { %1723 = vrot.lane.b32.xlu0 %v2612_v4, %s2796_s1 }
0x1c5f   :  { %v2614_v37 = vpop.eup %2613 }
0x1c60   :  { %v1717_v39 = vadd.f32 1.0, %v2614_v37 }
0x1c62   :  { %2615 = vrcp.f32 %v1717_v39 }
0x1c6f   :  { %v2616_v41 = vpop.eup %2615 }
0x1c70   :  { %v1721_v45 = vmul.f32 %v2616_v41, %v1632_v31 }
0x1cd0   :  { %v1724_v23 = vpop.permute.xlu0 %1723 }
0x1cd1   :  { %v1726_v43 = vmul.f32 %v2616_v41, %v1724_v23 }
0x1cd3   :  { %1728 = vrot.lane.b32.xlu1 %v1726_v43, %s2797_s24 }
0x1d45   :  { %v1729_v6 = vpop.permute.xlu1 %1728 }
0x1d46   :  { %v1731_v47 = vadd.f32 %v1729_v6, %v1721_v45 }
0x1d48   :  { %2617 = vtanh.f32 %v1731_v47 }
0x1d55   :  { %v2618_v48 = vpop.eup %2617 }
0x1d56   :  { %1734 = vrot.lane.b32.xlu0 %v2618_v48, %s2796_s1 }
0x1dc8   :  { %v1735_v5 = vpop.permute.xlu0 %1734 }
0x1dc9   :  { %v1737_v36 = vmul.f32 %v2616_v41, %v1735_v5 }
0x1dcb   :  { %v1740_v55 = vsel %vm584_vm8, %v1737_v36, 0.0  ;;  %v1738_v56 = vsel %vm584_vm8, %v1737_v36, %v1631_v33 }
0x1dcc   :  { %v1741_v57 = vadd.f32 %v1740_v55, %v1634_v54  ;;  %1743 = vrot.lane.b32.xlu1 %v1738_v56, %s2797_s24 }
0x1e3e   :  { %v1744_v7 = vpop.permute.xlu1 %1743 }
0x1e3f   :  { %2455 = vmatmul.mubr.msk.f32.vlgmr.msra.gmra.mxu0 %vm238_vm4, %v1744_v7 }
0x1e40   :  { %1998 = vmatpush1.msra.mxu0 %v3238_v42  ;;  %2037 = vmatprep.mubr.f32.mxu0 %v2794_v0 }
0x1e41   :  { %1999 = vmatprep.subr.mxu0 %v3262_v9 }
0x1e42   :  { %2000 = vmatpush1.msra.mxu0 %v3268_v12 }
0x1e43   :  { %2001 = vmatprep.subr.mxu0 %v3274_v14 }
0x1e44   :  { %2002 = vmatpush1.msra.mxu0 %v3280_v60 }
0x1e45   :  { %2003 = vmatprep.subr.mxu0 %v3283_v38 }
0x1e46   :  { %2004 = vmatpush1.msra.mxu0 %v3286_v61 }
0x1e47   :  { %2223 = vmatprep.subr.mxu0 %v3232_v3 }
0x1eff   :  { %v1813_v50 = vpop.f32.mrf.mxu0 }
0x1f00   :  { %v1819_v46 = vrot.slane %v1813_v50, 4 }
0x1f01   :  { %v1815_v59 = vpop.f32.mrf.mxu0 }
0x1f02   :  { %v1821_v8 = vadd.f32 %v1819_v46, %v3352_v10  ;;  %v1823_v11 = vrot.slane %v1815_v59, 4  ;;  %v1739_v10 = vsel %vm584_vm8, %v1731_v47, %v1632_v31 }
0x1f04   :  { %v1825_v13 = vadd.f32 %v1823_v11, %v3358_v18  ;;  %v1827_v2 = vrot.slane %v1821_v8, 4 }
0x1f06   :  { %v1830_v15 = vrot.slane %v1825_v13, 4 }
0x1f08   :  { %v1832_v44 = vsel %vm104_vm1, %v1827_v2, %v1830_v15 }
0x1f09   :  { %2619 = vtanh.f32 %v1832_v44  ;;  %v2456_v27 = vmul.f32 -1.442695, %v1832_v44 }
0x1f0b   :  { %2621 = vpow2.f32 %v2456_v27 }
0x1f16   :  { %v2620_v34 = vpop.eup %2619 }
0x1f17   :  { %1842 = vrot.lane.b32.xlu0 %v2620_v34, %s2796_s1 }
0x1f18   :  { %v2622_v20 = vpop.eup %2621 }
0x1f19   :  { %v1836_v3 = vadd.f32 1.0, %v2622_v20 }
0x1f1b   :  { %2623 = vrcp.f32 %v1836_v3 }
0x1f28   :  { %v2624_v26 = vpop.eup %2623 }
0x1f29   :  { %v1840_v18 = vmul.f32 %v2624_v26, %v1739_v10 }
0x1f89   :  { %v1843_v29 = vpop.permute.xlu0 %1842 }
0x1f8a   :  { %v1845_v30 = vmul.f32 %v2624_v26, %v1843_v29 }
0x1f8c   :  { %1847 = vrot.lane.b32.xlu1 %v1845_v30, %s2797_s24 }
0x1ffe   :  { %v1848_v24 = vpop.permute.xlu1 %1847 }
0x1fff   :  { %v1850_v33 = vadd.f32 %v1848_v24, %v1840_v18 }
0x2001   :  { %2625 = vtanh.f32 %v1850_v33  ;;  %v1858_v49 = vsel %vm710_vm10, %v1850_v33, %v1739_v10 }
0x200e   :  { %v2626_v22 = vpop.eup %2625 }
0x200f   :  { %1853 = vrot.lane.b32.xlu0 %v2626_v22, %s2796_s1 }
0x2081   :  { %v1854_v1 = vpop.permute.xlu0 %1853 }
0x2082   :  { %v1856_v21 = vmul.f32 %v2624_v26, %v1854_v1 }
0x2084   :  { %v1859_v53 = vsel %vm710_vm10, %v1856_v21, 0.0  ;;  %v1857_v35 = vsel %vm710_vm10, %v1856_v21, %v1738_v56 }
0x2085   :  { %v1860_v52 = vadd.f32 %v1859_v53, %v1741_v57  ;;  %1862 = vrot.lane.b32.xlu1 %v1857_v35, %s2797_s24 }
0x20f7   :  { %v1863_v28 = vpop.permute.xlu1 %1862 }
0x20f8   :  { %2457 = vmatmul.mubr.msk.f32.vlgmr.msra.gmra.mxu1 %vm238_vm4, %v1863_v28 }
0x20f9   :  { %2117 = vmatpush1.msra.mxu1 %v3238_v42  ;;  %2156 = vmatprep.mubr.f32.mxu1 %v2794_v0 }
0x20fa   :  { %2118 = vmatprep.subr.mxu1 %v3262_v9 }
0x20fb   :  { %2119 = vmatpush1.msra.mxu1 %v3268_v12 }
0x20fc   :  { %2120 = vmatprep.subr.mxu1 %v3274_v14 }
0x20fd   :  { %2121 = vmatpush1.msra.mxu1 %v3280_v60 }
0x20fe   :  { %2122 = vmatprep.subr.mxu1 %v3283_v38 }
0x20ff   :  { %2123 = vmatpush1.msra.mxu1 %v3286_v61 }
0x2100   :  { %2476 = vmatprep.subr.mxu1 %v2794_v0 }
0x21b8   :  { %v1932_v4 = vpop.f32.mrf.mxu1 }
0x21b9   :  { %v1937_v37 = vadd.f32 %v1932_v4, %v3356_v17 }
0x21ba   :  { %v1934_v32 = vpop.f32.mrf.mxu1 }
0x21bb   :  { %v1938_v39 = vadd.f32 %v1934_v32, %v3354_v16 }
0x21bd   :  { %v1939_v41 = vsel %vm104_vm1, %v1937_v37, %v1938_v39 }
0x21be   :  { %2627 = vtanh.f32 %v1939_v41  ;;  %v2458_v43 = vmul.f32 -1.442695, %v1939_v41 }
0x21c0   :  { %2629 = vpow2.f32 %v2458_v43 }
0x21cb   :  { %v2628_v23 = vpop.eup %2627 }
0x21cc   :  { %1949 = vrot.lane.b32.xlu0 %v2628_v23, %s2796_s1 }
0x21cd   :  { %v2630_v31 = vpop.eup %2629 }
0x21ce   :  { %v1943_v45 = vadd.f32 1.0, %v2630_v31 }
0x21d0   :  { %2631 = vrcp.f32 %v1943_v45 }
0x21dd   :  { %v2632_v6 = vpop.eup %2631 }
0x21de   :  { %v1947_v5 = vmul.f32 %v2632_v6, %v1858_v49 }
0x223e   :  { %v1950_v47 = vpop.permute.xlu0 %1949 }
0x223f   :  { %v1952_v48 = vmul.f32 %v2632_v6, %v1950_v47 }
0x2241   :  { %1954 = vrot.lane.b32.xlu1 %v1952_v48, %s2797_s24 }
0x22b3   :  { %v1955_v36 = vpop.permute.xlu1 %1954 }
0x22b4   :  { %v1957_v54 = vadd.f32 %v1955_v36, %v1947_v5 }
0x22b6   :  { %2633 = vtanh.f32 %v1957_v54 }
0x22c3   :  { %v2634_v55 = vpop.eup %2633 }
0x22c4   :  { %1960 = vrot.lane.b32.xlu0 %v2634_v55, %s2796_s1 }
0x2336   :  { %v1961_v56 = vpop.permute.xlu0 %1960 }
0x2337   :  { %v1963_v57 = vmul.f32 %v2632_v6, %v1961_v56 }
0x2339   :  { %v1966_v7 = vsel %vm824_vm12, %v1963_v57, 0.0  ;;  %v1964_v50 = vsel %vm824_vm12, %v1963_v57, %v1857_v35 }
0x233a   :  { %v1967_v46 = vadd.f32 %v1966_v7, %v1860_v52  ;;  %1969 = vrot.lane.b32.xlu1 %v1964_v50, %s2797_s24 }
0x23ac   :  { %v1970_v63 = vpop.permute.xlu1 %1969 }
0x23ad   :  { %2459 = vmatmul.mubr.msk.f32.vlgmr.msra.gmra.mxu0 %vm238_vm4, %v1970_v63 }
0x23ae   :  { %2224 = vmatpush1.msra.mxu0 %v3238_v42  ;;  %2263 = vmatprep.mubr.f32.mxu0 %v2794_v0 }
0x23af   :  { %2225 = vmatprep.subr.mxu0 %v3262_v9 }
0x23b0   :  { %2226 = vmatpush1.msra.mxu0 %v3268_v12 }
0x23b1   :  { %2227 = vmatprep.subr.mxu0 %v3274_v14 }
0x23b2   :  { %2228 = vmatpush1.msra.mxu0 %v3280_v60 }
0x23b3   :  { %2229 = vmatprep.subr.mxu0 %v3283_v38 }
0x23b4   :  { %2230 = vmatpush1.msra.mxu0 %v3286_v61 }
0x246d   :  { %v2039_v59 = vpop.f32.mrf.mxu0 }
0x246e   :  { %v2045_v8 = vrot.slane %v2039_v59, 4 }
0x246f   :  { %v2041_v11 = vpop.f32.mrf.mxu0 }
0x2470   :  { %v2047_v13 = vadd.f32 %v2045_v8, %v3356_v17  ;;  %v2049_v42 = vrot.slane %v2041_v11, 4 }
0x2472   :  { %v2051_v2 = vadd.f32 %v2049_v42, %v3354_v16  ;;  %v2053_v15 = vrot.slane %v2047_v13, 4  ;;  %v1965_v16 = vsel %vm824_vm12, %v1957_v54, %v1858_v49 }
0x2474   :  { %v2056_v9 = vrot.slane %v2051_v2, 4 }
0x2476   :  { %v2058_v12 = vsel %vm104_vm1, %v2053_v15, %v2056_v9 }
0x2477   :  { %2635 = vtanh.f32 %v2058_v12  ;;  %v2460_v60 = vmul.f32 -1.442695, %v2058_v12 }
0x2479   :  { %2637 = vpow2.f32 %v2460_v60  ;;  %v2326_v60 = vld [vmem:[%s3561_s8 + $0x30] sm:$0xff] }
0x2484   :  { %v2636_v14 = vpop.eup %2635 }
0x2485   :  { %2068 = vrot.lane.b32.xlu0 %v2636_v14, %s2796_s1  ;;  %v2327_v14 = vld [vmem:[%s3561_s8 + $0x38] sm:$0xff] }
0x2486   :  { %v2638_v38 = vpop.eup %2637 }
0x2487   :  { %v2062_v61 = vadd.f32 1.0, %v2638_v38  ;;  %v2324_v38 = vld [vmem:[%s3561_s8 + $0x20] sm:$0xff] }
0x2489   :  { %2639 = vrcp.f32 %v2062_v61 }
0x2496   :  { %v2640_v44 = vpop.eup %2639 }
0x2497   :  { %v2066_v17 = vmul.f32 %v2640_v44, %v1965_v16 }
0x24f7   :  { %v2069_v34 = vpop.permute.xlu0 %2068 }
0x24f8   :  { %v2071_v27 = vmul.f32 %v2640_v44, %v2069_v34  ;;  %v2322_v34 = vld [vmem:[%s3561_s8 + $0x10] sm:$0xff] }
0x24fa   :  { %2073 = vrot.lane.b32.xlu1 %v2071_v27, %s2797_s24  ;;  %v2321_v27 = vld [vmem:[%s3561_s8 + $0x8] sm:$0xff] }
0x256c   :  { %v2074_v20 = vpop.permute.xlu1 %2073 }
0x256d   :  { %v2076_v3 = vadd.f32 %v2074_v20, %v2066_v17 }
0x256f   :  { %2641 = vtanh.f32 %v2076_v3  ;;  %v2084_v41 = vsel %vm950_vm14, %v2076_v3, %v1965_v16  ;;  %v2320_v16 = vld [vmem:[%s3561_s8] sm:$0xff] }
0x257c   :  { %v2642_v26 = vpop.eup %2641 }
0x257d   :  { %2079 = vrot.lane.b32.xlu0 %v2642_v26, %s2796_s1 }
0x25ef   :  { %v2080_v29 = vpop.permute.xlu0 %2079 }
0x25f0   :  { %v2082_v30 = vmul.f32 %v2640_v44, %v2080_v29  ;;  %v2323_v44 = vld [vmem:[%s3561_s8 + $0x18] sm:$0xff] }
0x25f2   :  { %v2085_v10 = vsel %vm950_vm14, %v2082_v30, 0.0  ;;  %v2083_v18 = vsel %vm950_vm14, %v2082_v30, %v1964_v50 }
0x25f3   :  { %v2086_v24 = vadd.f32 %v2085_v10, %v1967_v46  ;;  %2088 = vrot.lane.b32.xlu1 %v2083_v18, %s2797_s24 }
0x2665   :  { %v2089_v51 = vpop.permute.xlu1 %2088 }
0x2666   :  { %2461 = vmatmul.mubr.msk.f32.vlgmr.msra.gmra.mxu1 %vm238_vm4, %v2089_v51 }
0x2667   :  { %2477 = vmatpush3.msra.mxu1 %v2327_v14 }
0x2668   :  { %2478 = vmatprep.subr.mxu1 %v2794_v0 }
0x2669   :  { %2479 = vmatpush3.msra.mxu1 %v2326_v60 }
0x266a   :  { %2480 = vmatprep.subr.mxu1 %v2794_v0 }
0x266b   :  { %2481 = vmatpush3.msra.mxu1 %v2325_v58 }
0x266c   :  { %2482 = vmatprep.subr.mxu1 %v2794_v0 }
0x266d   :  { %2483 = vmatpush3.msra.mxu1 %v2324_v38 }
0x266e   :  { %2484 = vmatprep.subr.mxu1 %v2794_v0 }
0x266f   :  { %2485 = vmatpush3.msra.mxu1 %v2323_v44 }
0x2670   :  { %2486 = vmatprep.subr.mxu1 %v2794_v0 }
0x2671   :  { %2487 = vmatpush3.msra.mxu1 %v2322_v34 }
0x2672   :  { %2488 = vmatprep.subr.mxu1 %v2794_v0 }
0x2673   :  { %2489 = vmatpush3.msra.mxu1 %v2321_v27 }
0x2674   :  { %2490 = vmatprep.subr.mxu1 %v2794_v0 }
0x2675   :  { %2491 = vmatpush3.msra.mxu1 %v2320_v16 }
0x2726   :  { %v2158_v33 = vpop.f32.mrf.mxu1 }
0x2727   :  { %v2163_v1 = vadd.f32 %v2158_v33, %v3360_v25 }
0x2728   :  { %v2160_v22 = vpop.f32.mrf.mxu1 }
0x2729   :  { %v2164_v21 = vadd.f32 %v2160_v22, %v3350_v40 }
0x272b   :  { %v2165_v53 = vsel %vm104_vm1, %v2163_v1, %v2164_v21 }
0x272c   :  { %2643 = vtanh.f32 %v2165_v53  ;;  %v2462_v52 = vmul.f32 -1.442695, %v2165_v53 }
0x272e   :  { %2645 = vpow2.f32 %v2462_v52 }
0x2739   :  { %v2644_v35 = vpop.eup %2643 }
0x273a   :  { %2175 = vrot.lane.b32.xlu0 %v2644_v35, %s2796_s1 }
0x273b   :  { %v2646_v28 = vpop.eup %2645 }
0x273c   :  { %v2169_v4 = vadd.f32 1.0, %v2646_v28 }
0x273e   :  { %2647 = vrcp.f32 %v2169_v4 }
0x274b   :  { %v2648_v32 = vpop.eup %2647 }
0x274c   :  { %v2173_v23 = vmul.f32 %v2648_v32, %v2084_v41 }
0x27ac   :  { %v2176_v37 = vpop.permute.xlu0 %2175 }
0x27ad   :  { %v2178_v39 = vmul.f32 %v2648_v32, %v2176_v37 }
0x27af   :  { %2180 = vrot.lane.b32.xlu1 %v2178_v39, %s2797_s24 }
0x2821   :  { %v2181_v43 = vpop.permute.xlu1 %2180 }
0x2822   :  { %v2183_v31 = vadd.f32 %v2181_v43, %v2173_v23 }
0x2824   :  { %2649 = vtanh.f32 %v2183_v31 }
0x2831   :  { %v2650_v45 = vpop.eup %2649 }
0x2832   :  { %2186 = vrot.lane.b32.xlu0 %v2650_v45, %s2796_s1 }
0x28a4   :  { %v2187_v6 = vpop.permute.xlu0 %2186 }
0x28a5   :  { %v2189_v47 = vmul.f32 %v2648_v32, %v2187_v6 }
0x28a7   :  { %v2192_v48 = vsel %vm1064_vm0, %v2189_v47, 0.0  ;;  %v2190_v49 = vsel %vm1064_vm0, %v2189_v47, %v2083_v18 }
0x28a8   :  { %v2193_v5 = vadd.f32 %v2192_v48, %v2086_v24  ;;  %2195 = vrot.lane.b32.xlu1 %v2190_v49, %s2797_s24 }
0x291a   :  { %v2196_v19 = vpop.permute.xlu1 %2195 }
0x291b   :  { %2463 = vmatmul.mubr.msk.f32.vlgmr.msra.gmra.mxu0 %vm238_vm4, %v2196_v19 }
0x29db   :  { %v2265_v36 = vpop.f32.mrf.mxu0 }
0x29dc   :  { %v2271_v54 = vrot.slane %v2265_v36, 4 }
0x29dd   :  { %v2267_v55 = vpop.f32.mrf.mxu0 }
0x29de   :  { %v2273_v56 = vadd.f32 %v2271_v54, %v3360_v25  ;;  %v2275_v57 = vrot.slane %v2267_v55, 4 }
0x29e0   :  { %v2277_v7 = vadd.f32 %v2275_v57, %v3350_v40  ;;  %v2279_v50 = vrot.slane %v2273_v56, 4  ;;  %v2191_v40 = vsel %vm1064_vm0, %v2183_v31, %v2084_v41 }
0x29e2   :  { %v2282_v46 = vrot.slane %v2277_v7, 4 }
0x29e4   :  { %v2284_v63 = vsel %vm104_vm1, %v2279_v50, %v2282_v46  ;;  %vm2812_vm1 = vmmov 0  }
0x29e5   :  { %2651 = vtanh.f32 %v2284_v63  ;;  %v2464_v8 = vmul.f32 -1.442695, %v2284_v63  ;;  %2492 = vmatprep.mubr.msk.f32.mxu1 %vm2812_vm1, %v2794_v0  ;;  %v2465_v0 = vld [vmem:[%s3562_s9] ss:$0 sm:$0xff] }
0x29e7   :  { %2653 = vpow2.f32 %v2464_v8 }
0x29f2   :  { %v2652_v59 = vpop.eup %2651 }
0x29f3   :  { %2294 = vrot.lane.b32.xlu0 %v2652_v59, %s2796_s1 }
0x29f4   :  { %v2654_v11 = vpop.eup %2653 }
0x29f5   :  { %v2288_v13 = vadd.f32 1.0, %v2654_v11 }
0x29f7   :  { %2655 = vrcp.f32 %v2288_v13 }
0x2a04   :  { %v2656_v42 = vpop.eup %2655 }
0x2a05   :  { %v2292_v25 = vmul.f32 %v2656_v42, %v2191_v40 }
0x2a65   :  { %v2295_v2 = vpop.permute.xlu0 %2294 }
0x2a66   :  { %v2297_v15 = vmul.f32 %v2656_v42, %v2295_v2 }
0x2a68   :  { %2299 = vrot.lane.b32.xlu1 %v2297_v15, %s2797_s24 }
0x2ada   :  { %v2300_v9 = vpop.permute.xlu1 %2299 }
0x2adb   :  { %v2302_v12 = vadd.f32 %v2300_v9, %v2292_v25 }
0x2add   :  { %2657 = vtanh.f32 %v2302_v12 }
0x2aea   :  { %v2658_v61 = vpop.eup %2657 }
0x2aeb   :  { %2305 = vrot.lane.b32.xlu0 %v2658_v61, %s2796_s1 }
0x2b5d   :  { %v2306_v17 = vpop.permute.xlu0 %2305 }
0x2b5e   :  { %v2308_v20 = vmul.f32 %v2656_v42, %v2306_v17 }
0x2b60   :  { %v2309_v3 = vsel %vm1190_vm5, %v2308_v20, 0.0 }
0x2b61   :  { %v2310_v26 = vadd.f32 %v2309_v3, %v2193_v5 }
0x2b63   :  { %2312 = vrot.lane.b32.xlu1 %v2310_v26, %s2797_s24  ;;  %v2315_v29 = vrot.slane %v2310_v26, 4  ;;  %s2759_s24 = scalar_lea.vmem %s2417_s30, 64 }
0x2b64   :  { %p2760_p11 = scmp.ne.s32.totalorder %s2417_s30, %s2759_s24  ;;  %p2765_p13 = scmp.lt.s32.totalorder %s2759_s24, %s2759_s24 }
0x2b65   :  { %2316 = vrot.lane.b32.xlu0 %v2315_v29, %s2796_s1 }
0x2b66   :  { %p2766_p0 = por %p2765_p13, %p2764_p12 }
0x2b68   :  { %p2767_p1 = pnand %p2766_p0, %p2760_p11 }
0x2bd5   :  { %v2313_v30 = vpop.permute.xlu1 %2312 }
0x2bd7   :  { %v2317_v10 = vpop.permute.xlu0 %2316 }
0x2bd8   :  { %v2319_v18 = vsel %vm238_vm4, %v2313_v30, %v2317_v10 }
0x2bd9   :  { %2493 = vmatmul.mubr.msk.f32.vlgmr.msra.gmra.mxu1 %vm1305_vm7, %v2319_v18 }
0x2c99   :  { %v2404_v62 = vpop.f32.mrf.mxu1 }
0x2c9a   :  { %v2405_v24 = vadd.f32 %v2465_v0, %v2404_v62 }
0x2c9b   :  { %v2494_v51 = vpop.f32.mrf.mxu1 }
0x2c9c   :  { %2409 = vst.msk [vmem:[#allocation11] sm:$0xf] %vm2408_vm3, %v2405_v24 }
0x2c9d   :  { %2770 = shalt.err (!%p2767_p1)
}
0x2c9e   :  { %2419 = dma.vmem_to_hbm [thread:$0]  %s2417_s30, 64, %s3563_s10, [#allocation4]  }
0x2c9f   :  { %2785 = dma.done.wait [#allocation4], 64  }
0x2ca0   :  { %2786 = vsyncadd [#allocation4], 4294967232 }
0x2ca1   :  { %2423 = vsyncpa [#allocation3], 1 }
0x2ca2   :  { %2424 = vsyncpa [#allocation6], 1 }
0x2ca3   :  { %2425 = vsyncpa [#allocation9], 1 }
0x2ca4   :  { %2426 = vsyncpa [#allocation4], 1 }

</bundles_post_ra>
